<compile_context>
chip_gen: v7x
topology: tpu7x:2x2x1
jax: 0.10.0
libtpu: 0.0.40
codegen_flags: <defaults>
</compile_context>

<pallas_src>
import jax
import jax.numpy as jnp
from jax.experimental import pallas as pl
from jax.experimental.pallas import tpu as pltpu

EPS = 1e-5          # BatchNorm1d default eps
NEG_SLOPE = 0.1     # LeakyReLU(0.1)
H1, H2, H3 = 1028, 512, 128   # module hidden widths
H1_PAD = 1152                 # 1028 -> next multiple of 128 (lane-dense)


def _leaky_relu(x):
    return jnp.where(x >= 0, x, NEG_SLOPE * x)


def _round_up(x, m):
    return (x + m - 1) // m * m


# --------------------------------------------------------------------------- #
# Kernel: 4 matmuls + 3 LeakyReLUs on one batch tile.  BN already folded.
# --------------------------------------------------------------------------- #
def decoder_kernel(zc_ref,
                   w1_ref, b1_ref, w2_ref, b2_ref,
                   w3_ref, b3_ref, w4_ref, b4_ref,
                   out_ref):
    h = zc_ref[...]                                   # f32 [TILE_B, 32]
    for w_ref, b_ref in ((w1_ref, b1_ref), (w2_ref, b2_ref), (w3_ref, b3_ref)):
        h = jnp.dot(h.astype(jnp.bfloat16), w_ref[...],
                    preferred_element_type=jnp.float32) + b_ref[...]
        h = _leaky_relu(h)
    out_ref[...] = jnp.dot(h.astype(jnp.bfloat16), w4_ref[...],
                           preferred_element_type=jnp.float32) + b4_ref[...]


# --------------------------------------------------------------------------- #
# Parameters (PyTorch-equivalent shapes; weights stored as [in, out]).
# --------------------------------------------------------------------------- #
def init_decoder_params(key, input_size, condition_size, latent_size):
    dims_in = [latent_size + condition_size, H1, H2, H3]
    dims_out = [H1, H2, H3, input_size]
    params = {}
    ks = jax.random.split(key, 20)
    ki = 0
    for li, (din, dout) in enumerate(zip(dims_in, dims_out), start=1):
        bound = 1.0 / float(din) ** 0.5
        params[f"w{li}"] = jax.random.uniform(ks[ki], (din, dout), jnp.float32,
                                              -bound, bound); ki += 1
        params[f"b{li}"] = jax.random.uniform(ks[ki], (1, dout), jnp.float32,
                                              -bound, bound); ki += 1
    # Eval-mode BatchNorm1d params — randomized (not defaults) so the BN fold
    # is actually exercised by the correctness check.
    for li, dout in enumerate([H1, H2, H3], start=1):
        params[f"g{li}"] = jax.random.uniform(ks[ki], (1, dout), jnp.float32, 0.5, 1.5); ki += 1
        params[f"be{li}"] = 0.1 * jax.random.normal(ks[ki], (1, dout), jnp.float32); ki += 1
        params[f"m{li}"] = 0.1 * jax.random.normal(ks[ki], (1, dout), jnp.float32); ki += 1
        params[f"v{li}"] = jax.random.uniform(ks[ki], (1, dout), jnp.float32, 0.5, 1.5); ki += 1
    return params


def prepare_decoder_params(params):
    """One-time prep: fold eval-mode BN into the next Linear, zero-pad to
    lane-dense widths, cast weights to bf16 (biases stay f32)."""
    def bn_scale_shift(li):
        scale = params[f"g{li}"] * jax.lax.rsqrt(params[f"v{li}"] + EPS)   # (1, D)
        shift = params[f"be{li}"] - params[f"m{li}"] * scale               # (1, D)
        return scale, shift

    w1, b1 = params["w1"], params["b1"]
    s1, t1 = bn_scale_shift(1)
    w2 = params["w2"] * s1.T
    b2 = params["b2"] + t1 @ params["w2"]
    s2, t2 = bn_scale_shift(2)
    w3 = params["w3"] * s2.T
    b3 = params["b3"] + t2 @ params["w3"]
    s3, t3 = bn_scale_shift(3)
    w4 = params["w4"] * s3.T
    b4 = params["b4"] + t3 @ params["w4"]

    # Pad 1028 -> 1152 (cols of w1/b1, rows of w2) and out_dim -> mult of 128.
    pad1 = H1_PAD - H1
    w1 = jnp.pad(w1, ((0, 0), (0, pad1)))
    b1 = jnp.pad(b1, ((0, 0), (0, pad1)))
    w2 = jnp.pad(w2, ((0, pad1), (0, 0)))
    out_dim = params["w4"].shape[1]
    out_pad = _round_up(out_dim, 128)
    w4 = jnp.pad(w4, ((0, 0), (0, out_pad - out_dim)))
    b4 = jnp.pad(b4, ((0, 0), (0, out_pad - out_dim)))

    bf16 = lambda w: w.astype(jnp.bfloat16)
    prepped = (bf16(w1), b1, bf16(w2), b2, bf16(w3), b3, bf16(w4), b4)
    return prepped, out_dim


# --------------------------------------------------------------------------- #
# Forward wrapper: batch grid, weights resident, batch axis parallel.
# --------------------------------------------------------------------------- #
def decoder_forward(z, c, prepped, out_dim, *, max_tile_b=256):
    w1, b1, w2, b2, w3, b3, w4, b4 = prepped
    zc = jnp.concatenate([z, c], axis=1).astype(jnp.float32)
    batch, in_dim = zc.shape
    out_pad = w4.shape[1]

    tile_b = min(max_tile_b, _round_up(batch, 8))
    b_pad = _round_up(batch, tile_b)
    if b_pad != batch:
        zc = jnp.pad(zc, ((0, b_pad - batch), (0, 0)))
    grid = (b_pad // tile_b,)

    act_spec = pl.BlockSpec((tile_b, in_dim), lambda i: (i, 0))
    out_spec = pl.BlockSpec((tile_b, out_pad), lambda i: (i, 0))
    const_spec = lambda a: pl.BlockSpec(a.shape, lambda i: (0, 0))  # resident

    out = pl.pallas_call(
        decoder_kernel,
        out_shape=jax.ShapeDtypeStruct((b_pad, out_pad), jnp.float32),
        grid=grid,
        in_specs=[act_spec] + [const_spec(a) for a in (w1, b1, w2, b2, w3, b3, w4, b4)],
        out_specs=out_spec,
        compiler_params=pltpu.CompilerParams(
            dimension_semantics=("parallel",)),
    )(zc, w1, b1, w2, b2, w3, b3, w4, b4)
    return out[:batch, :out_dim]


# --------------------------------------------------------------------------- #
# References
# --------------------------------------------------------------------------- #
def decoder_reference(z, c, params):
    """Pure-JAX f32 reference with the original module semantics (Linear ->
    LeakyReLU -> eval-mode BatchNorm, x3, then output Linear)."""
    h = jnp.concatenate([z, c], axis=1)
    for li in (1, 2, 3):
        h = h @ params[f"w{li}"] + params[f"b{li}"]
        h = jnp.where(h >= 0, h, NEG_SLOPE * h)
        h = ((h - params[f"m{li}"]) * jax.lax.rsqrt(params[f"v{li}"] + EPS)
             * params[f"g{li}"] + params[f"be{li}"])
    return h @ params["w4"] + params["b4"]


def prepared_reference(zc, prepped):
    """Pure-JAX reference using the same folded/padded bf16 params as the kernel."""
    w1, b1, w2, b2, w3, b3, w4, b4 = prepped
    h = zc
    for w, b in ((w1, b1), (w2, b2), (w3, b3)):
        h = jnp.dot(h.astype(jnp.bfloat16), w, preferred_element_type=jnp.float32) + b
        h = jnp.where(h >= 0, h, NEG_SLOPE * h)
    return jnp.dot(h.astype(jnp.bfloat16), w4, preferred_element_type=jnp.float32) + b4


if __name__ == "__main__":
    input_size = 64
    condition_size = 16
    latent_size = 16
    batch = 8

    key = jax.random.PRNGKey(0)
    kz, kc, kp = jax.random.split(key, 3)
    z = jax.random.normal(kz, (batch, latent_size), jnp.float32)
    c = jax.random.normal(kc, (batch, condition_size), jnp.float32)
    params = init_decoder_params(kp, input_size, condition_size, latent_size)

    prepped, out_dim = prepare_decoder_params(params)   # one-time, outside the fwd

    out = decoder_forward(z, c, prepped, out_dim)
    out = jax.block_until_ready(out)
    assert out.shape == (batch, input_size)

    # (a) matched-precision reference (same folded bf16 weights): tight check.
    ref_bf16 = prepared_reference(jnp.concatenate([z, c], axis=1), prepped)[:, :out_dim]
    assert jnp.allclose(out, ref_bf16, atol=2e-3, rtol=2e-3), \
        "mismatch vs matched-precision reference"

    # (b) original-module f32 semantics: loose check (bf16 weight quantization).
    ref_f32 = decoder_reference(z, c, params)
    assert jnp.allclose(out, ref_f32, atol=5e-2, rtol=5e-2), \
        "mismatch vs f32 reference"

    print("KERNEL_OK")
</pallas_src>

<mosaic_0001>
module attributes {stable_mosaic.version = 11 : i64} {
  func.func @decoder_kernel(%arg0: i32, %arg1: memref<8x32xf32, #tpu.memory_space<vmem>>, %arg2: memref<32x1152xbf16, #tpu.memory_space<vmem>>, %arg3: memref<1x1152xf32, #tpu.memory_space<vmem>>, %arg4: memref<1152x512xbf16, #tpu.memory_space<vmem>>, %arg5: memref<1x512xf32, #tpu.memory_space<vmem>>, %arg6: memref<512x128xbf16, #tpu.memory_space<vmem>>, %arg7: memref<1x128xf32, #tpu.memory_space<vmem>>, %arg8: memref<128x128xbf16, #tpu.memory_space<vmem>>, %arg9: memref<1x128xf32, #tpu.memory_space<vmem>>, %arg10: memref<8x128xf32, #tpu.memory_space<vmem>>) attributes {dimension_semantics = [#tpu.dimension_semantics<parallel>], iteration_bounds = array<i64: 1>, scalar_prefetch = 0 : i64, scratch_operands = 0 : i64, tpu.core_type = #tpu.core_type<tc>, window_params = [{transform_indices = @transform_0, window_bounds = array<i64: 8, 32>}, {pipeline_mode = #tpu.pipeline_mode<synchronous>, transform_indices = @transform_1, window_bounds = array<i64: 32, 1152>}, {pipeline_mode = #tpu.pipeline_mode<synchronous>, transform_indices = @transform_2, window_bounds = array<i64: 1, 1152>}, {pipeline_mode = #tpu.pipeline_mode<synchronous>, transform_indices = @transform_3, window_bounds = array<i64: 1152, 512>}, {pipeline_mode = #tpu.pipeline_mode<synchronous>, transform_indices = @transform_4, window_bounds = array<i64: 1, 512>}, {pipeline_mode = #tpu.pipeline_mode<synchronous>, transform_indices = @transform_5, window_bounds = array<i64: 512, 128>}, {pipeline_mode = #tpu.pipeline_mode<synchronous>, transform_indices = @transform_6, window_bounds = array<i64: 1, 128>}, {pipeline_mode = #tpu.pipeline_mode<synchronous>, transform_indices = @transform_7, window_bounds = array<i64: 128, 128>}, {pipeline_mode = #tpu.pipeline_mode<synchronous>, transform_indices = @transform_8, window_bounds = array<i64: 1, 128>}, {transform_indices = @transform_9, window_bounds = array<i64: 8, 128>}]} {
    %c0 = arith.constant 0 : index
    %c0_0 = arith.constant 0 : index
    %0 = vector.load %arg1[%c0, %c0_0] : memref<8x32xf32, #tpu.memory_space<vmem>>, vector<8x32xf32>
    %1 = arith.truncf %0 : vector<8x32xf32> to vector<8x32xbf16>
    %c0_1 = arith.constant 0 : index
    %c0_2 = arith.constant 0 : index
    %2 = vector.load %arg2[%c0_1, %c0_2] : memref<32x1152xbf16, #tpu.memory_space<vmem>>, vector<32x1152xbf16>
    %cst = arith.constant dense<0.000000e+00> : vector<8x1152xf32>
    %3 = tpu.matmul %1, %2, %cst {dimension_numbers = #tpu.dot_dimension_numbers<[1], [0], [0], [1], [0, 0, 1, 1], [], []>} : vector<8x32xbf16>, vector<32x1152xbf16>, vector<8x1152xf32> -> vector<8x1152xf32>
    %c0_3 = arith.constant 0 : index
    %c0_4 = arith.constant 0 : index
    %4 = vector.load %arg3[%c0_3, %c0_4] : memref<1x1152xf32, #tpu.memory_space<vmem>>, vector<1x1152xf32>
    %5 = vector.broadcast %4 : vector<1x1152xf32> to vector<8x1152xf32>
    %6 = arith.addf %3, %5 : vector<8x1152xf32>
    %cst_5 = arith.constant 0.000000e+00 : f32
    %7 = vector.broadcast %cst_5 : f32 to vector<8x1152xf32>
    %8 = arith.cmpf oge, %6, %7 : vector<8x1152xf32>
    %cst_6 = arith.constant 1.000000e-01 : f32
    %9 = vector.broadcast %cst_6 : f32 to vector<8x1152xf32>
    %10 = arith.mulf %9, %6 : vector<8x1152xf32>
    %11 = arith.select %8, %6, %10 : vector<8x1152xi1>, vector<8x1152xf32>
    %12 = arith.truncf %11 : vector<8x1152xf32> to vector<8x1152xbf16>
    %c0_7 = arith.constant 0 : index
    %c0_8 = arith.constant 0 : index
    %13 = vector.load %arg4[%c0_7, %c0_8] : memref<1152x512xbf16, #tpu.memory_space<vmem>>, vector<1152x512xbf16>
    %cst_9 = arith.constant dense<0.000000e+00> : vector<8x512xf32>
    %14 = tpu.matmul %12, %13, %cst_9 {dimension_numbers = #tpu.dot_dimension_numbers<[1], [0], [0], [1], [0, 0, 1, 1], [], []>} : vector<8x1152xbf16>, vector<1152x512xbf16>, vector<8x512xf32> -> vector<8x512xf32>
    %c0_10 = arith.constant 0 : index
    %c0_11 = arith.constant 0 : index
    %15 = vector.load %arg5[%c0_10, %c0_11] : memref<1x512xf32, #tpu.memory_space<vmem>>, vector<1x512xf32>
    %16 = vector.broadcast %15 : vector<1x512xf32> to vector<8x512xf32>
    %17 = arith.addf %14, %16 : vector<8x512xf32>
    %cst_12 = arith.constant 0.000000e+00 : f32
    %18 = vector.broadcast %cst_12 : f32 to vector<8x512xf32>
    %19 = arith.cmpf oge, %17, %18 : vector<8x512xf32>
    %cst_13 = arith.constant 1.000000e-01 : f32
    %20 = vector.broadcast %cst_13 : f32 to vector<8x512xf32>
    %21 = arith.mulf %20, %17 : vector<8x512xf32>
    %22 = arith.select %19, %17, %21 : vector<8x512xi1>, vector<8x512xf32>
    %23 = arith.truncf %22 : vector<8x512xf32> to vector<8x512xbf16>
    %c0_14 = arith.constant 0 : index
    %c0_15 = arith.constant 0 : index
    %24 = vector.load %arg6[%c0_14, %c0_15] : memref<512x128xbf16, #tpu.memory_space<vmem>>, vector<512x128xbf16>
    %cst_16 = arith.constant dense<0.000000e+00> : vector<8x128xf32>
    %25 = tpu.matmul %23, %24, %cst_16 {dimension_numbers = #tpu.dot_dimension_numbers<[1], [0], [0], [1], [0, 0, 1, 1], [], []>} : vector<8x512xbf16>, vector<512x128xbf16>, vector<8x128xf32> -> vector<8x128xf32>
    %c0_17 = arith.constant 0 : index
    %c0_18 = arith.constant 0 : index
    %26 = vector.load %arg7[%c0_17, %c0_18] : memref<1x128xf32, #tpu.memory_space<vmem>>, vector<1x128xf32>
    %27 = vector.broadcast %26 : vector<1x128xf32> to vector<8x128xf32>
    %28 = arith.addf %25, %27 : vector<8x128xf32>
    %cst_19 = arith.constant 0.000000e+00 : f32
    %29 = vector.broadcast %cst_19 : f32 to vector<8x128xf32>
    %30 = arith.cmpf oge, %28, %29 : vector<8x128xf32>
    %cst_20 = arith.constant 1.000000e-01 : f32
    %31 = vector.broadcast %cst_20 : f32 to vector<8x128xf32>
    %32 = arith.mulf %31, %28 : vector<8x128xf32>
    %33 = arith.select %30, %28, %32 : vector<8x128xi1>, vector<8x128xf32>
    %34 = arith.truncf %33 : vector<8x128xf32> to vector<8x128xbf16>
    %c0_21 = arith.constant 0 : index
    %c0_22 = arith.constant 0 : index
    %35 = vector.load %arg8[%c0_21, %c0_22] : memref<128x128xbf16, #tpu.memory_space<vmem>>, vector<128x128xbf16>
    %cst_23 = arith.constant dense<0.000000e+00> : vector<8x128xf32>
    %36 = tpu.matmul %34, %35, %cst_23 {dimension_numbers = #tpu.dot_dimension_numbers<[1], [0], [0], [1], [0, 0, 1, 1], [], []>} : vector<8x128xbf16>, vector<128x128xbf16>, vector<8x128xf32> -> vector<8x128xf32>
    %c0_24 = arith.constant 0 : index
    %c0_25 = arith.constant 0 : index
    %37 = vector.load %arg9[%c0_24, %c0_25] : memref<1x128xf32, #tpu.memory_space<vmem>>, vector<1x128xf32>
    %38 = vector.broadcast %37 : vector<1x128xf32> to vector<8x128xf32>
    %39 = arith.addf %36, %38 : vector<8x128xf32>
    %c0_26 = arith.constant 0 : index
    %c0_27 = arith.constant 0 : index
    %40 = vector.load %arg10[%c0_26, %c0_27] : memref<8x128xf32, #tpu.memory_space<vmem>>, vector<8x128xf32>
    tpu.vector_store %arg10[%c0_26, %c0_27], %39 {strides = array<i32>} : memref<8x128xf32, #tpu.memory_space<vmem>>, vector<8x128xf32>,
    return
  }
  func.func @transform_0(%arg0: i32) -> (i32, i32) {
    %c0_i32 = arith.constant 0 : i32
    %c0_i32_0 = arith.constant 0 : i32
    return %arg0, %c0_i32 : i32, i32
  }
  func.func @transform_1(%arg0: i32) -> (i32, i32) {
    %c0_i32 = arith.constant 0 : i32
    %c0_i32_0 = arith.constant 0 : i32
    %c0_i32_1 = arith.constant 0 : i32
    return %c0_i32, %c0_i32_0 : i32, i32
  }
  func.func @transform_2(%arg0: i32) -> (i32, i32) {
    %c0_i32 = arith.constant 0 : i32
    %c0_i32_0 = arith.constant 0 : i32
    %c0_i32_1 = arith.constant 0 : i32
    return %c0_i32, %c0_i32_0 : i32, i32
  }
  func.func @transform_3(%arg0: i32) -> (i32, i32) {
    %c0_i32 = arith.constant 0 : i32
    %c0_i32_0 = arith.constant 0 : i32
    %c0_i32_1 = arith.constant 0 : i32
    return %c0_i32, %c0_i32_0 : i32, i32
  }
  func.func @transform_4(%arg0: i32) -> (i32, i32) {
    %c0_i32 = arith.constant 0 : i32
    %c0_i32_0 = arith.constant 0 : i32
    %c0_i32_1 = arith.constant 0 : i32
    return %c0_i32, %c0_i32_0 : i32, i32
  }
  func.func @transform_5(%arg0: i32) -> (i32, i32) {
    %c0_i32 = arith.constant 0 : i32
    %c0_i32_0 = arith.constant 0 : i32
    %c0_i32_1 = arith.constant 0 : i32
    return %c0_i32, %c0_i32_0 : i32, i32
  }
  func.func @transform_6(%arg0: i32) -> (i32, i32) {
    %c0_i32 = arith.constant 0 : i32
    %c0_i32_0 = arith.constant 0 : i32
    %c0_i32_1 = arith.constant 0 : i32
    return %c0_i32, %c0_i32_0 : i32, i32
  }
  func.func @transform_7(%arg0: i32) -> (i32, i32) {
    %c0_i32 = arith.constant 0 : i32
    %c0_i32_0 = arith.constant 0 : i32
    %c0_i32_1 = arith.constant 0 : i32
    return %c0_i32, %c0_i32_0 : i32, i32
  }
  func.func @transform_8(%arg0: i32) -> (i32, i32) {
    %c0_i32 = arith.constant 0 : i32
    %c0_i32_0 = arith.constant 0 : i32
    %c0_i32_1 = arith.constant 0 : i32
    return %c0_i32, %c0_i32_0 : i32, i32
  }
  func.func @transform_9(%arg0: i32) -> (i32, i32) {
    %c0_i32 = arith.constant 0 : i32
    %c0_i32_0 = arith.constant 0 : i32
    return %arg0, %c0_i32 : i32, i32
  }
}

</mosaic_0001>

<bundles_post_ra>
// kernel: tpu_custom_call.1
= control target key start
LH: loop header
LB: loop body
LE: loop exit
PB: predicated region body
PF: predicated region fallthrough
CT: control target
= control target key end

     0   :  { %14 = vsyncpa [#allocation3], 0  ;;  %s4705_s0 = inlined_call_operand.hbm [shape: f32[8,32], index: 0, kind: input, shape index: {}]   ;;  %s4706_s1 = inlined_call_operand.hbm [shape: bf16[32,1152], index: 1, kind: input, shape index: {}]   ;;  %s4707_s2 = inlined_call_operand.hbm [shape: f32[1,1152], index: 2, kind: input, shape index: {}]   ;;  %s4708_s3 = inlined_call_operand.hbm [shape: bf16[1152,512], index: 3, kind: input, shape index: {}]   ;;  %s4709_s4 = inlined_call_operand.hbm [shape: f32[1,512], index: 4, kind: input, shape index: {}]   ;;  %s4710_s5 = inlined_call_operand.hbm [shape: bf16[512,128], index: 5, kind: input, shape index: {}]   ;;  %s4711_s6 = inlined_call_operand.hbm [shape: f32[1,128], index: 6, kind: input, shape index: {}]   ;;  %s4712_s7 = inlined_call_operand.hbm [shape: bf16[128,128], index: 7, kind: input, shape index: {}]   ;;  %s4713_s8 = inlined_call_operand.hbm [shape: f32[1,128], index: 8, kind: input, shape index: {}]   ;;  %s4714_s9 = inlined_call_operand.hbm [shape: f32[8,128], index: 9, kind: output, shape index: {}]  }
   0x1   :  { %15 = vsyncpa [#allocation6], 0 }
   0x2   :  { %16 = vsyncpa [#allocation9], 0 }
   0x3   :  { %17 = vsyncpa [#allocation12], 0 }
   0x4   :  { %18 = vsyncpa [#allocation15], 0 }
   0x5   :  { %19 = vsyncpa [#allocation4], 0  ;;  %s4430_s30 = smov [#allocation5]   ;;  %s4198_s13 = scalar_lea.hbm %s4706_s1, 2304 }
   0x6   :  { %s35_s10 = sshll.u32 %s4430_s30, 4  ;;  %p4199_p0 = scmp.ne.s32.totalorder %s4706_s1, %s4198_s13  ;;  %s36_s10 = int_to_ptr.vmem [resolvable:$true] %s35_s10 }
   0x7   :  { %p4202_p1 = scmp.lt.u32.totalorder %s4198_s13, %s4706_s1 }
   0x9   :  { %p4204_p2 = pnand %p4202_p1, %p4199_p0 }
   0xb   :  { %4207 = shalt.err (!%p4204_p2)
}
   0xc   :  { %s4208_s18 = scalar_lea.vmem %s36_s10, 2304  ;;  %p4213_p4 = scmp.lt.s32.totalorder %s36_s10, %s36_s10 }
   0xd   :  { %p4209_p3 = scmp.ne.s32.totalorder %s36_s10, %s4208_s18  ;;  %p4214_p5 = scmp.lt.s32.totalorder %s4208_s18, %s4208_s18 }
   0xf   :  { %p4215_p6 = por %p4214_p5, %p4213_p4 }
  0x11   :  { %p4216_p7 = pnand %p4215_p6, %p4209_p3 }
  0x13   :  { %4219 = shalt.err (!%p4216_p7)
}
  0x14   :  { %s4431_s19 = smov 576   ;;  %s4432_s20 = smov 36  }
  0x15   :  { %41 = dma.hbm_to_vmem [thread:$0]  %s4706_s1, 2304, %s36_s10, [#allocation6], %s4431_s19, %s4431_s19, %s4432_s20  }
  0x16   :  { %s4433_s23 = smov [#allocation8]   ;;  %s4220_s27 = scalar_lea.hbm %s4708_s3, 36864 }
  0x17   :  { %s57_s24 = sshll.u32 %s4433_s23, 4  ;;  %p4221_p8 = scmp.ne.s32.totalorder %s4708_s3, %s4220_s27  ;;  %s58_s24 = int_to_ptr.vmem [resolvable:$true] %s57_s24 }
  0x18   :  { %p4224_p9 = scmp.lt.u32.totalorder %s4220_s27, %s4708_s3 }
  0x1a   :  { %p4226_p10 = pnand %p4224_p9, %p4221_p8 }
  0x1c   :  { %4229 = shalt.err (!%p4226_p10)
}
  0x1d   :  { %s4230_s12 = scalar_lea.vmem %s58_s24, 36864  ;;  %p4235_p12 = scmp.lt.s32.totalorder %s58_s24, %s58_s24 }
  0x1e   :  { %p4231_p11 = scmp.ne.s32.totalorder %s58_s24, %s4230_s12  ;;  %p4236_p13 = scmp.lt.s32.totalorder %s4230_s12, %s4230_s12 }
  0x20   :  { %p4237_p0 = por %p4236_p13, %p4235_p12 }
  0x22   :  { %p4238_p1 = pnand %p4237_p0, %p4231_p11 }
  0x24   :  { %4241 = shalt.err (!%p4238_p1)
}
  0x25   :  { %s4434_s1 = smov 256   ;;  %s4435_s10 = smov 16  }
  0x26   :  { %63 = dma.hbm_to_vmem [thread:$0]  %s4708_s3, 36864, %s58_s24, [#allocation9], %s4434_s1, %s4434_s1, %s4435_s10  }
  0x27   :  { %s4436_s15 = smov [#allocation11]   ;;  %s4242_s19 = scalar_lea.hbm %s4710_s5, 4096 }
  0x28   :  { %s79_s16 = sshll.u32 %s4436_s15, 4  ;;  %p4243_p2 = scmp.ne.s32.totalorder %s4710_s5, %s4242_s19  ;;  %s80_s16 = int_to_ptr.vmem [resolvable:$true] %s79_s16 }
  0x29   :  { %p4246_p3 = scmp.lt.u32.totalorder %s4242_s19, %s4710_s5 }
  0x2b   :  { %p4248_p4 = pnand %p4246_p3, %p4243_p2 }
  0x2d   :  { %4251 = shalt.err (!%p4248_p4)
}
  0x2e   :  { %s4252_s25 = scalar_lea.vmem %s80_s16, 4096  ;;  %p4257_p6 = scmp.lt.s32.totalorder %s80_s16, %s80_s16 }
  0x2f   :  { %p4253_p5 = scmp.ne.s32.totalorder %s80_s16, %s4252_s25  ;;  %p4258_p7 = scmp.lt.s32.totalorder %s4252_s25, %s4252_s25 }
  0x31   :  { %p4259_p8 = por %p4258_p7, %p4257_p6 }
  0x33   :  { %p4260_p9 = pnand %p4259_p8, %p4253_p5 }
  0x35   :  { %4263 = shalt.err (!%p4260_p9)
}
  0x36   :  { %s4437_s3 = smov 64   ;;  %s4438_s24 = smov 4  }
  0x37   :  { %85 = dma.hbm_to_vmem [thread:$0]  %s4710_s5, 4096, %s80_s16, [#allocation12], %s4437_s3, %s4437_s3, %s4438_s24  }
  0x38   :  { %s4439_s28 = smov [#allocation14]   ;;  %s4440_s30 = smov [#allocation2]  }
  0x39   :  { %s101_s29 = sshll.u32 %s4439_s28, 4  ;;  %s26_s11 = sshll.u32 %s4440_s30, 4  ;;  %s102_s29 = int_to_ptr.vmem [resolvable:$true] %s101_s29  ;;  %s27_s11 = int_to_ptr.vmem [resolvable:$true] %s26_s11 }
  0x3a   :  { %s4264_s10 = scalar_lea.hbm %s4712_s7, 1024 }
  0x3b   :  { %p4265_p10 = scmp.ne.s32.totalorder %s4712_s7, %s4264_s10  ;;  %p4268_p11 = scmp.lt.u32.totalorder %s4264_s10, %s4712_s7 }
  0x3d   :  { %p4270_p12 = pnand %p4268_p11, %p4265_p10 }
  0x3f   :  { %4273 = shalt.err (!%p4270_p12)
}
  0x40   :  { %s4274_s5 = scalar_lea.vmem %s102_s29, 1024  ;;  %p4279_p0 = scmp.lt.s32.totalorder %s102_s29, %s102_s29 }
  0x41   :  { %p4275_p13 = scmp.ne.s32.totalorder %s102_s29, %s4274_s5  ;;  %p4280_p1 = scmp.lt.s32.totalorder %s4274_s5, %s4274_s5 }
  0x43   :  { %p4281_p2 = por %p4280_p1, %p4279_p0 }
  0x45   :  { %p4282_p3 = pnand %p4281_p2, %p4275_p13 }
  0x47   :  { %4285 = shalt.err (!%p4282_p3)
}
  0x48   :  { %107 = dma.hbm_to_vmem [thread:$0]  %s4712_s7, 1024, %s102_s29, [#allocation15], %s4437_s3, %s4437_s3, %s4438_s24  }
  0x49   :  { %s4286_s21 = scalar_lea.hbm %s4705_s0, 128 }
  0x4a   :  { %p4287_p4 = scmp.ne.s32.totalorder %s4705_s0, %s4286_s21  ;;  %p4290_p5 = scmp.lt.u32.totalorder %s4286_s21, %s4705_s0 }
  0x4c   :  { %p4292_p6 = pnand %p4290_p5, %p4287_p4 }
  0x4e   :  { %4295 = shalt.err (!%p4292_p6)
}
  0x4f   :  { %s4296_s27 = scalar_lea.vmem %s27_s11, 128  ;;  %p4301_p8 = scmp.lt.s32.totalorder %s27_s11, %s27_s11 }
  0x50   :  { %p4297_p7 = scmp.ne.s32.totalorder %s27_s11, %s4296_s27  ;;  %p4302_p9 = scmp.lt.s32.totalorder %s4296_s27, %s4296_s27 }
  0x52   :  { %p4303_p10 = por %p4302_p9, %p4301_p8 }
  0x54   :  { %p4304_p11 = pnand %p4303_p10, %p4297_p7 }
  0x56   :  { %4307 = shalt.err (!%p4304_p11)
}
  0x57   :  { %29 = dma.hbm_to_vmem [thread:$0]  %s4705_s0, 128, %s27_s11, [#allocation3]  }
  0x58   :  { %s4441_s24 = smov [#allocation7]   ;;  %s4442_s29 = smov [#allocation10]  }
  0x59   :  { %s48_s28 = sshll.u32 %s4441_s24, 4  ;;  %s70_s30 = sshll.u32 %s4442_s29, 4  ;;  %s49_s28 = int_to_ptr.vmem [resolvable:$true] %s48_s28  ;;  %s71_s30 = int_to_ptr.vmem [resolvable:$true] %s70_s30 }
  0x5a   :  { %s4308_s10 = scalar_lea.hbm %s4707_s2, 144 }
  0x5b   :  { %p4309_p12 = scmp.ne.s32.totalorder %s4707_s2, %s4308_s10  ;;  %p4312_p13 = scmp.lt.u32.totalorder %s4308_s10, %s4707_s2 }
  0x5d   :  { %p4314_p0 = pnand %p4312_p13, %p4309_p12 }
  0x5f   :  { %4317 = shalt.err (!%p4314_p0)
}
  0x60   :  { %s4318_s0 = scalar_lea.vmem %s49_s28, 144  ;;  %s4322_s11 = scalar_lea.vmem %s49_s28, 160 }
  0x61   :  { %p4319_p1 = scmp.ne.s32.totalorder %s49_s28, %s4318_s0  ;;  %p4323_p2 = scmp.lt.s32.totalorder %s49_s28, %s49_s28 }
  0x62   :  { %p4324_p3 = scmp.lt.s32.totalorder %s4322_s11, %s4318_s0 }
  0x64   :  { %p4325_p4 = por %p4324_p3, %p4323_p2 }
  0x66   :  { %p4326_p5 = pnand %p4325_p4, %p4319_p1 }
  0x68   :  { %4329 = shalt.err (!%p4326_p5)
}
  0x69   :  { %51 = dma.hbm_to_vmem [thread:$0]  %s4707_s2, 144, %s49_s28, [#allocation6]  }
  0x6a   :  { %s4330_s20 = scalar_lea.hbm %s4709_s4, 64 }
  0x6b   :  { %p4331_p6 = scmp.ne.s32.totalorder %s4709_s4, %s4330_s20  ;;  %p4334_p7 = scmp.lt.u32.totalorder %s4330_s20, %s4709_s4 }
  0x6d   :  { %p4336_p8 = pnand %p4334_p7, %p4331_p6 }
  0x6f   :  { %4339 = shalt.err (!%p4336_p8)
}
  0x70   :  { %s4340_s26 = scalar_lea.vmem %s71_s30, 64  ;;  %p4345_p10 = scmp.lt.s32.totalorder %s71_s30, %s71_s30 }
  0x71   :  { %p4341_p9 = scmp.ne.s32.totalorder %s71_s30, %s4340_s26  ;;  %p4346_p11 = scmp.lt.s32.totalorder %s4340_s26, %s4340_s26 }
  0x73   :  { %p4347_p12 = por %p4346_p11, %p4345_p10 }
  0x75   :  { %p4348_p13 = pnand %p4347_p12, %p4341_p9 }
  0x77   :  { %4351 = shalt.err (!%p4348_p13)
}
  0x78   :  { %73 = dma.hbm_to_vmem [thread:$0]  %s4709_s4, 64, %s71_s30, [#allocation9]  }
  0x79   :  { %s4443_s7 = smov [#allocation13]   ;;  %s4444_s24 = smov [#allocation16]  }
  0x7a   :  { %s92_s3 = sshll.u32 %s4443_s7, 4  ;;  %s114_s28 = sshll.u32 %s4444_s24, 4  ;;  %s93_s3 = int_to_ptr.vmem [resolvable:$true] %s92_s3  ;;  %s115_s28 = int_to_ptr.vmem [resolvable:$true] %s114_s28 }
  0x7b   :  { %s4352_s1 = scalar_lea.hbm %s4711_s6, 16 }
  0x7c   :  { %p4353_p0 = scmp.ne.s32.totalorder %s4711_s6, %s4352_s1  ;;  %p4356_p1 = scmp.lt.u32.totalorder %s4352_s1, %s4711_s6 }
  0x7e   :  { %p4358_p2 = pnand %p4356_p1, %p4353_p0 }
  0x80   :  { %4361 = shalt.err (!%p4358_p2)
}
  0x81   :  { %s4362_s4 = scalar_lea.vmem %s93_s3, 16  ;;  %s4366_s30 = scalar_lea.vmem %s93_s3, 32 }
  0x82   :  { %p4363_p3 = scmp.ne.s32.totalorder %s93_s3, %s4362_s4  ;;  %p4367_p4 = scmp.lt.s32.totalorder %s93_s3, %s93_s3 }
  0x83   :  { %p4368_p5 = scmp.lt.s32.totalorder %s4366_s30, %s4362_s4 }
  0x85   :  { %p4369_p6 = por %p4368_p5, %p4367_p4 }
  0x87   :  { %p4370_p7 = pnand %p4369_p6, %p4363_p3 }
  0x89   :  { %4373 = shalt.err (!%p4370_p7)
}
  0x8a   :  { %95 = dma.hbm_to_vmem [thread:$0]  %s4711_s6, 16, %s93_s3, [#allocation12]  }
  0x8b   :  { %s4374_s16 = scalar_lea.hbm %s4713_s8, 16 }
  0x8c   :  { %p4375_p8 = scmp.ne.s32.totalorder %s4713_s8, %s4374_s16  ;;  %p4378_p9 = scmp.lt.u32.totalorder %s4374_s16, %s4713_s8 }
  0x8e   :  { %p4380_p10 = pnand %p4378_p9, %p4375_p8 }
  0x90   :  { %4383 = shalt.err (!%p4380_p10)
}
  0x91   :  { %s4384_s22 = scalar_lea.vmem %s115_s28, 16  ;;  %s4388_s23 = scalar_lea.vmem %s115_s28, 32 }
  0x92   :  { %p4385_p11 = scmp.ne.s32.totalorder %s115_s28, %s4384_s22  ;;  %p4389_p12 = scmp.lt.s32.totalorder %s115_s28, %s115_s28 }
  0x93   :  { %p4390_p13 = scmp.lt.s32.totalorder %s4388_s23, %s4384_s22 }
  0x95   :  { %p4391_p0 = por %p4390_p13, %p4389_p12 }
  0x97   :  { %p4392_p1 = pnand %p4391_p0, %p4385_p11 }
  0x99   :  { %4395 = shalt.err (!%p4392_p1)
}
  0x9a   :  { %117 = dma.hbm_to_vmem [thread:$0]  %s4713_s8, 16, %s115_s28, [#allocation15]  }
  0x9b   :  { %4418 = dma.done.wait [#allocation3], 128  }
  0x9c   :  { %4419 = vsyncadd [#allocation3], 4294967168 }
  0x9d   :  { %4420 = dma.done.wait [#allocation6], 2448  }
  0x9e   :  { %4421 = vsyncadd [#allocation6], 4294964848 }
  0x9f   :  { %4422 = dma.done.wait [#allocation9], 36928  }
  0xa0   :  { %4423 = vsyncadd [#allocation9], 4294930368 }
  0xa1   :  { %4424 = dma.done.wait [#allocation12], 4112  }
  0xa2   :  { %4425 = vsyncadd [#allocation12], 4294963184 }
  0xa3   :  { %4426 = dma.done.wait [#allocation15], 1040  }
  0xa4   :  { %4427 = vsyncadd [#allocation15], 4294966256  ;;  %v4445_v0 = vmov 0   ;;  %v3700_v1 = vld [vmem:[#allocation5 + $0x4] ss:$36 sps:$4 sm:$0xff]   ;;  %v146_v5 = vld [vmem:[#allocation2] sm:$0xff] }
  0xa5   :  { %345 = vmatprep.mubr.bf16.mxu0 %v4445_v0  ;;  %468 = vmatprep.mubr.bf16.mxu1 %v4445_v0  ;;  %v3702_v2 = vld [vmem:[#allocation5] ss:$36 sps:$4 sm:$0xff]   ;;  %v3703_v3 = vld [vmem:[#allocation5 + $0x4c] ss:$36 sps:$4 sm:$0xff]   ;;  %v4609_v7 = vpack.c.bf16 %v146_v5, %v146_v5  ;;  %vm309_vm0 = vcmask 261120   ;;  %v4446_v25 = vmov 0.0  }
  0xa6   :  { %313 = vmatprep.subr.bf16.mxu0 %v3700_v1  ;;  %v3705_v4 = vld [vmem:[#allocation5 + $0x48] ss:$36 sps:$4 sm:$0xff]   ;;  %v3711_v9 = vld [vmem:[#allocation5 + $0x54] ss:$36 sps:$4 sm:$0xff]   ;;  %v3718_v10 = vld [vmem:[#allocation5 + $0x1c] ss:$36 sps:$4 sm:$0xff]  }
  0xa7   :  { %314 = vmatpush1.bf16.msra.mxu0 %v3702_v2  ;;  %v3708_v6 = vld [vmem:[#allocation5 + $0xc] ss:$36 sps:$4 sm:$0xff]   ;;  %v3720_v11 = vld [vmem:[#allocation5 + $0x18] ss:$36 sps:$4 sm:$0xff]   ;;  %v3722_v13 = vld [vmem:[#allocation5 + $0x64] ss:$36 sps:$4 sm:$0xff]   ;;  %436 = vmatprep.subr.bf16.mxu1 %v3718_v10 }
  0xa8   :  { %315 = vmatprep.subr.bf16.mxu0 %v3703_v3  ;;  %v3706_v8 = vld [vmem:[#allocation5 + $0x8] ss:$36 sps:$4 sm:$0xff]   ;;  %v3709_v12 = vld [vmem:[#allocation5 + $0x50] ss:$36 sps:$4 sm:$0xff]   ;;  %437 = vmatpush1.bf16.msra.mxu1 %v3720_v11  ;;  %v3724_v15 = vld [vmem:[#allocation5 + $0x60] ss:$36 sps:$4 sm:$0xff]  }
  0xa9   :  { %v3714_v14 = vld [vmem:[#allocation5 + $0x14] ss:$36 sps:$4 sm:$0xff]   ;;  %438 = vmatprep.subr.bf16.mxu1 %v3722_v13  ;;  %v3728_v16 = vld [vmem:[#allocation8 + $0x4] ss:$16 sps:$4 sm:$0xff]   ;;  %vm4447_vm1 = vmmov 0   ;;  %s4448_s8 = smov [#allocation17]  }
  0xaa   :  { %v3712_v17 = vld [vmem:[#allocation5 + $0x10] ss:$36 sps:$4 sm:$0xff]   ;;  %v3717_v18 = vld [vmem:[#allocation5 + $0x5c] ss:$36 sps:$4 sm:$0xff]   ;;  %v3725_v28 = vld [vmem:[#allocation5 + $0x68] ss:$36 sps:$4 sm:$0xff]  }
  0xab   :  { %316 = vmatpush1.bf16.msra.mxu0 %v3705_v4  ;;  %v3726_v19 = vld [vmem:[#allocation8] ss:$16 sps:$4 sm:$0xff]   ;;  %v3734_v20 = vld [vmem:[#allocation8 + $0x24] ss:$16 sps:$4 sm:$0xff]   ;;  %v3731_v29 = vld [vmem:[#allocation8 + $0xc] ss:$16 sps:$4 sm:$0xff]  }
  0xac   :  { %354 = vmatprep.subr.bf16.mxu0 %v3708_v6  ;;  %439 = vmatpush1.bf16.msra.mxu1 %v3724_v15  ;;  %v3715_v21 = vld [vmem:[#allocation5 + $0x58] ss:$36 sps:$4 sm:$0xff]   ;;  %v3721_v24 = vld [vmem:[#allocation5 + $0x20] ss:$36 sps:$4 sm:$0xff]   ;;  %s3194_s26 = sshll.u32 %s4448_s8, 4  ;;  %s3195_s26 = int_to_ptr.vmem [resolvable:$true] %s3194_s26 }
  0xad   :  { %2303 = vmatprep.subr.bf16.mxu1 %v3728_v16  ;;  %v3732_v22 = vld [vmem:[#allocation8 + $0x20] ss:$16 sps:$4 sm:$0xff]   ;;  %v3740_v23 = vld [vmem:[#allocation8 + $0x44] ss:$16 sps:$4 sm:$0xff]   ;;  %v3729_v32 = vld [vmem:[#allocation8 + $0x8] ss:$16 sps:$4 sm:$0xff]   ;;  %p4401_p3 = scmp.lt.s32.totalorder %s3195_s26, %s3195_s26 }
  0xae   :  { %3226 = vmatmul.mubr.msk.bf16.vlgmr.msra.gmra.mrb[0].mxu0 %vm309_vm0, %v4609_v7  ;;  %v3738_v26 = vld [vmem:[#allocation8 + $0x40] ss:$16 sps:$4 sm:$0xff]   ;;  %v3746_v27 = vld [vmem:[#allocation8 + $0x64] ss:$16 sps:$4 sm:$0xff]   ;;  %v3737_v33 = vld [vmem:[#allocation8 + $0x2c] ss:$16 sps:$4 sm:$0xff]  }
  0xaf   :  { %355 = vmatpush1.bf16.msra.mxu0 %v3706_v8  ;;  %386 = vmatprep.mubr.bf16.mxu0 %v4445_v0  ;;  %v3744_v30 = vld [vmem:[#allocation8 + $0x60] ss:$16 sps:$4 sm:$0xff]   ;;  %v3752_v31 = vld [vmem:[#allocation8 + $0x84] ss:$16 sps:$4 sm:$0xff]   ;;  %v3735_v36 = vld [vmem:[#allocation8 + $0x28] ss:$16 sps:$4 sm:$0xff]  }
  0xb0   :  { %356 = vmatprep.subr.bf16.mxu0 %v3711_v9  ;;  %3229 = vmatmul.mubr.msk.bf16.vlgmr.msra.gmra.mrb[0].mxu1 %vm309_vm0, %v4609_v7  ;;  %v3750_v34 = vld [vmem:[#allocation8 + $0x80] ss:$16 sps:$4 sm:$0xff]   ;;  %v3758_v35 = vld [vmem:[#allocation8 + $0xa4] ss:$16 sps:$4 sm:$0xff]   ;;  %v3743_v37 = vld [vmem:[#allocation8 + $0x4c] ss:$16 sps:$4 sm:$0xff]  }
  0xb1   :  { %2304 = vmatpush1.bf16.msra.mxu1 %v3726_v19  ;;  %v3756_v38 = vld [vmem:[#allocation8 + $0xa0] ss:$16 sps:$4 sm:$0xff]   ;;  %v3764_v39 = vld [vmem:[#allocation8 + $0xc4] ss:$16 sps:$4 sm:$0xff]   ;;  %v3741_v40 = vld [vmem:[#allocation8 + $0x48] ss:$16 sps:$4 sm:$0xff]  }
  0xb2   :  { %2305 = vmatprep.subr.bf16.mxu1 %v3734_v20  ;;  %v3749_v41 = vld [vmem:[#allocation8 + $0x6c] ss:$16 sps:$4 sm:$0xff]   ;;  %v3762_v42 = vld [vmem:[#allocation8 + $0xc0] ss:$16 sps:$4 sm:$0xff]   ;;  %v3770_v43 = vld [vmem:[#allocation8 + $0xe4] ss:$16 sps:$4 sm:$0xff]  }
  0xb3   :  { %357 = vmatpush1.bf16.msra.mxu0 %v3709_v12  ;;  %v3747_v44 = vld [vmem:[#allocation8 + $0x68] ss:$16 sps:$4 sm:$0xff]   ;;  %v3755_v45 = vld [vmem:[#allocation8 + $0x8c] ss:$16 sps:$4 sm:$0xff]   ;;  %v3768_v46 = vld [vmem:[#allocation8 + $0xe0] ss:$16 sps:$4 sm:$0xff]  }
  0xb4   :  { %395 = vmatprep.subr.bf16.mxu0 %v3714_v14  ;;  %v3776_v47 = vld [vmem:[#allocation8 + $0x104] ss:$16 sps:$4 sm:$0xff]   ;;  %v3753_v48 = vld [vmem:[#allocation8 + $0x88] ss:$16 sps:$4 sm:$0xff]   ;;  %v3761_v49 = vld [vmem:[#allocation8 + $0xac] ss:$16 sps:$4 sm:$0xff]  }
  0xb5   :  { %2306 = vmatpush1.bf16.msra.mxu1 %v3732_v22  ;;  %v3759_v50 = vld [vmem:[#allocation8 + $0xa8] ss:$16 sps:$4 sm:$0xff]   ;;  %v3774_v51 = vld [vmem:[#allocation8 + $0x100] ss:$16 sps:$4 sm:$0xff]   ;;  %v3767_v52 = vld [vmem:[#allocation8 + $0xcc] ss:$16 sps:$4 sm:$0xff]  }
  0xb6   :  { %3227 = vmatmul.mubr.msk.bf16.vlgmr.msra.gmra.mrb[4].mxu0 %vm309_vm0, %v4609_v7  ;;  %2307 = vmatprep.subr.bf16.mxu1 %v3740_v23  ;;  %v3782_v53 = vld [vmem:[#allocation8 + $0x124] ss:$16 sps:$4 sm:$0xff]   ;;  %v3780_v54 = vld [vmem:[#allocation8 + $0x120] ss:$16 sps:$4 sm:$0xff]   ;;  %v3765_v56 = vld [vmem:[#allocation8 + $0xc8] ss:$16 sps:$4 sm:$0xff]  }
  0xb7   :  { %396 = vmatpush1.bf16.msra.mxu0 %v3712_v17  ;;  %427 = vmatprep.mubr.bf16.mxu0 %v4445_v0  ;;  %v3788_v55 = vld [vmem:[#allocation8 + $0x144] ss:$16 sps:$4 sm:$0xff]   ;;  %v3773_v57 = vld [vmem:[#allocation8 + $0xec] ss:$16 sps:$4 sm:$0xff]   ;;  %v3786_v58 = vld [vmem:[#allocation8 + $0x140] ss:$16 sps:$4 sm:$0xff]  }
  0xb8   :  { %397 = vmatprep.subr.bf16.mxu0 %v3717_v18  ;;  %v3794_v59 = vld [vmem:[#allocation8 + $0x164] ss:$16 sps:$4 sm:$0xff]   ;;  %v3771_v60 = vld [vmem:[#allocation8 + $0xe8] ss:$16 sps:$4 sm:$0xff]   ;;  %v3779_v61 = vld [vmem:[#allocation8 + $0x10c] ss:$16 sps:$4 sm:$0xff]  }
  0xb9   :  { %2308 = vmatpush1.bf16.msra.mxu1 %v3738_v26  ;;  %v3792_v62 = vld [vmem:[#allocation8 + $0x160] ss:$16 sps:$4 sm:$0xff]   ;;  %v3800_v63 = vld [vmem:[#allocation8 + $0x184] ss:$16 sps:$4 sm:$0xff]   ;;  %v3777_v1 = vld [vmem:[#allocation8 + $0x108] ss:$16 sps:$4 sm:$0xff]   ;;  %v172_v26 = vlaneseq }
  0xba   :  { %2309 = vmatprep.subr.bf16.mxu1 %v3746_v27  ;;  %v3785_v2 = vld [vmem:[#allocation8 + $0x12c] ss:$16 sps:$4 sm:$0xff]   ;;  %v3798_v3 = vld [vmem:[#allocation8 + $0x180] ss:$16 sps:$4 sm:$0xff]   ;;  %v3806_v4 = vld [vmem:[#allocation8 + $0x1a4] ss:$16 sps:$4 sm:$0xff]  }
  0xbb   :  { %398 = vmatpush1.bf16.msra.mxu0 %v3715_v21  ;;  %v3783_v5 = vld [vmem:[#allocation8 + $0x128] ss:$16 sps:$4 sm:$0xff]   ;;  %v3791_v6 = vld [vmem:[#allocation8 + $0x14c] ss:$16 sps:$4 sm:$0xff]   ;;  %v3812_v15 = vld [vmem:[#allocation8 + $0x1c4] ss:$16 sps:$4 sm:$0xff]  }
  0xbc   :  { %3617 = vmatprep.subr.bf16.mxu0 %v4446_v25  ;;  %v3789_v8 = vld [vmem:[#allocation8 + $0x148] ss:$16 sps:$4 sm:$0xff]   ;;  %v3797_v9 = vld [vmem:[#allocation8 + $0x16c] ss:$16 sps:$4 sm:$0xff]   ;;  %v3810_v17 = vld [vmem:[#allocation8 + $0x1c0] ss:$16 sps:$4 sm:$0xff]  }
  0xbd   :  { %2310 = vmatpush1.bf16.msra.mxu1 %v3744_v30  ;;  %v3795_v10 = vld [vmem:[#allocation8 + $0x168] ss:$16 sps:$4 sm:$0xff]   ;;  %v3803_v11 = vld [vmem:[#allocation8 + $0x18c] ss:$16 sps:$4 sm:$0xff]   ;;  %v3818_v19 = vld [vmem:[#allocation8 + $0x1e4] ss:$16 sps:$4 sm:$0xff]  }
  0xbe   :  { %3228 = vmatmul.mubr.msk.bf16.vlgmr.msra.gmra.mrb[8].mxu0 %vm309_vm0, %v4609_v7  ;;  %2311 = vmatprep.subr.bf16.mxu1 %v3752_v31  ;;  %v3801_v12 = vld [vmem:[#allocation8 + $0x188] ss:$16 sps:$4 sm:$0xff]   ;;  %v3809_v13 = vld [vmem:[#allocation8 + $0x1ac] ss:$16 sps:$4 sm:$0xff]   ;;  %v3816_v21 = vld [vmem:[#allocation8 + $0x1e0] ss:$16 sps:$4 sm:$0xff]  }
  0xbf   :  { %3618 = vmatpush3.bf16.msra.mxu0 %v3721_v24  ;;  %3621 = vmatprep.mubr.msk.bf16.mxu0 %vm4447_vm1, %v4446_v25  ;;  %v3807_v14 = vld [vmem:[#allocation8 + $0x1a8] ss:$16 sps:$4 sm:$0xff]   ;;  %v3815_v16 = vld [vmem:[#allocation8 + $0x1cc] ss:$16 sps:$4 sm:$0xff]   ;;  %v3824_v23 = vld [vmem:[#allocation8 + $0x204] ss:$16 sps:$4 sm:$0xff]  }
  0xc0   :  { %3619 = vmatprep.subr.bf16.mxu0 %v4446_v25  ;;  %v3813_v18 = vld [vmem:[#allocation8 + $0x1c8] ss:$16 sps:$4 sm:$0xff]   ;;  %v3821_v20 = vld [vmem:[#allocation8 + $0x1ec] ss:$16 sps:$4 sm:$0xff]   ;;  %v4627_v27 = vshrl.u32 %v172_v26, 7  ;;  %s4396_s2 = scalar_lea.vmem %s3195_s26, 128 }
  0xc1   :  { %2312 = vmatpush1.bf16.msra.mxu1 %v3750_v34  ;;  %v3819_v22 = vld [vmem:[#allocation8 + $0x1e8] ss:$16 sps:$4 sm:$0xff]   ;;  %v3827_v24 = vld [vmem:[#allocation8 + $0x20c] ss:$16 sps:$4 sm:$0xff]   ;;  %p4397_p2 = scmp.ne.s32.totalorder %s3195_s26, %s4396_s2  ;;  %p4402_p4 = scmp.lt.s32.totalorder %s4396_s2, %s4396_s2 }
  0xc2   :  { %2313 = vmatprep.subr.bf16.mxu1 %v3758_v35  ;;  %v178_v30 = vsub.s32 1, %v4627_v27 }
  0xc3   :  { %3620 = vmatpush3.bf16.msra.mxu0 %v3725_v28  ;;  %v174_v28 = vsub.s32 0, %v4627_v27  ;;  %p4403_p5 = por %p4402_p4, %p4401_p3 }
  0xc4   :  { %2508 = vmatprep.subr.bf16.mxu0 %v3731_v29  ;;  %v4630_v29 = vld [vmem:[#allocation7] sm:$0xff] }
  0xc5   :  { %2314 = vmatpush1.bf16.msra.mxu1 %v3756_v38  ;;  %v175_v31 = vrot.slane %v4630_v29, %v174_v28  ;;  %v186_v38 = vsub.s32 3, %v4627_v27  ;;  %p4404_p6 = pnand %p4403_p5, %p4397_p2 }
  0xc6   :  { %3622 = vmatmul.mubr.msk.bf16.vlgmr.msra.gmra.mrb[12].mxu0 %vm309_vm0, %v4609_v7  ;;  %2315 = vmatprep.subr.bf16.mxu1 %v3764_v39  ;;  %v3804_v7 = vld [vmem:[#allocation8 + $0x1a0] ss:$16 sps:$4 sm:$0xff]  }
  0xc7   :  { %2509 = vmatpush1.bf16.msra.mxu0 %v3729_v32  ;;  %v179_v32 = vrot.slane %v4630_v29, %v178_v30 }
  0xc8   :  { %2510 = vmatprep.subr.bf16.mxu0 %v3737_v33 }
  0xc9   :  { %2316 = vmatpush1.bf16.msra.mxu1 %v3762_v42 }
  0xca   :  { %2317 = vmatprep.subr.bf16.mxu1 %v3770_v43 }
  0xcb   :  { %2511 = vmatpush1.bf16.msra.mxu0 %v3735_v36 }
  0xcc   :  { %2512 = vmatprep.subr.bf16.mxu0 %v3743_v37 }
  0xcd   :  { %2318 = vmatpush1.bf16.msra.mxu1 %v3768_v46  ;;  %v3822_v46 = vld [vmem:[#allocation8 + $0x200] ss:$16 sps:$4 sm:$0xff]  }
  0xce   :  { %2319 = vmatprep.subr.bf16.mxu1 %v3776_v47  ;;  %v3825_v47 = vld [vmem:[#allocation8 + $0x208] ss:$16 sps:$4 sm:$0xff]  }
  0xcf   :  { %2513 = vmatpush1.bf16.msra.mxu0 %v3741_v40 }
  0xd0   :  { %2514 = vmatprep.subr.bf16.mxu0 %v3749_v41 }
  0xd1   :  { %2320 = vmatpush1.bf16.msra.mxu1 %v3774_v51 }
  0xd2   :  { %2321 = vmatprep.subr.bf16.mxu1 %v3782_v53  ;;  %v3828_v53 = vld [vmem:[#allocation8 + $0x220] ss:$16 sps:$4 sm:$0xff]  }
  0xd3   :  { %2515 = vmatpush1.bf16.msra.mxu0 %v3747_v44  ;;  %v187_v44 = vrot.slane %v4630_v29, %v186_v38 }
  0xd4   :  { %2516 = vmatprep.subr.bf16.mxu0 %v3755_v45 }
  0xd5   :  { %2322 = vmatpush1.bf16.msra.mxu1 %v3780_v54 }
  0xd6   :  { %2323 = vmatprep.subr.bf16.mxu1 %v3788_v55 }
  0xd7   :  { %2517 = vmatpush1.bf16.msra.mxu0 %v3753_v48 }
  0xd8   :  { %2518 = vmatprep.subr.bf16.mxu0 %v3761_v49  ;;  %v3830_v49 = vld [vmem:[#allocation8 + $0x224] ss:$16 sps:$4 sm:$0xff]  }
  0xd9   :  { %2324 = vmatpush1.bf16.msra.mxu1 %v3786_v58 }
  0xda   :  { %2325 = vmatprep.subr.bf16.mxu1 %v3794_v59  ;;  %v3839_v59 = vld [vmem:[#allocation8 + $0x24c] ss:$16 sps:$4 sm:$0xff]  }
  0xdb   :  { %2519 = vmatpush1.bf16.msra.mxu0 %v3759_v50  ;;  %v3833_v50 = vld [vmem:[#allocation8 + $0x22c] ss:$16 sps:$4 sm:$0xff]  }
  0xdc   :  { %2520 = vmatprep.subr.bf16.mxu0 %v3767_v52 }
  0xdd   :  { %2326 = vmatpush1.bf16.msra.mxu1 %v3792_v62  ;;  %v3834_v62 = vld [vmem:[#allocation8 + $0x240] ss:$16 sps:$4 sm:$0xff]  }
  0xde   :  { %2327 = vmatprep.subr.bf16.mxu1 %v3800_v63  ;;  %v3837_v63 = vld [vmem:[#allocation8 + $0x248] ss:$16 sps:$4 sm:$0xff]  }
  0xdf   :  { %2521 = vmatpush1.bf16.msra.mxu0 %v3765_v56  ;;  %v3831_v56 = vld [vmem:[#allocation8 + $0x228] ss:$16 sps:$4 sm:$0xff]  }
  0xe0   :  { %2522 = vmatprep.subr.bf16.mxu0 %v3773_v57  ;;  %v3836_v57 = vld [vmem:[#allocation8 + $0x244] ss:$16 sps:$4 sm:$0xff]  }
  0xe1   :  { %2328 = vmatpush1.bf16.msra.mxu1 %v3798_v3  ;;  %v3845_v3 = vld [vmem:[#allocation8 + $0x26c] ss:$16 sps:$4 sm:$0xff]  }
  0xe2   :  { %2329 = vmatprep.subr.bf16.mxu1 %v3806_v4 }
  0xe3   :  { %2523 = vmatpush1.bf16.msra.mxu0 %v3771_v60 }
  0xe4   :  { %2524 = vmatprep.subr.bf16.mxu0 %v3779_v61 }
  0xe5   :  { %2330 = vmatpush1.bf16.msra.mxu1 %v3804_v7  ;;  %v3840_v7 = vld [vmem:[#allocation8 + $0x260] ss:$16 sps:$4 sm:$0xff]  }
  0xe6   :  { %2331 = vmatprep.subr.bf16.mxu1 %v3812_v15  ;;  %v3857_v15 = vld [vmem:[#allocation8 + $0x2ac] ss:$16 sps:$4 sm:$0xff]  }
  0xe7   :  { %2525 = vmatpush1.bf16.msra.mxu0 %v3777_v1 }
  0xe8   :  { %2526 = vmatprep.subr.bf16.mxu0 %v3785_v2  ;;  %v3842_v2 = vld [vmem:[#allocation8 + $0x264] ss:$16 sps:$4 sm:$0xff]  }
  0xe9   :  { %2332 = vmatpush1.bf16.msra.mxu1 %v3810_v17  ;;  %v3852_v17 = vld [vmem:[#allocation8 + $0x2a0] ss:$16 sps:$4 sm:$0xff]  }
  0xea   :  { %2333 = vmatprep.subr.bf16.mxu1 %v3818_v19 }
  0xeb   :  { %2527 = vmatpush1.bf16.msra.mxu0 %v3783_v5 }
  0xec   :  { %2528 = vmatprep.subr.bf16.mxu0 %v3791_v6 }
  0xed   :  { %2334 = vmatpush1.bf16.msra.mxu1 %v3816_v21  ;;  %v3860_v21 = vld [vmem:[#allocation8 + $0x2c4] ss:$16 sps:$4 sm:$0xff]  }
  0xee   :  { %2344 = vmatprep.subr.bf16.mxu1 %v3824_v23 }
  0xef   :  { %2529 = vmatpush1.bf16.msra.mxu0 %v3789_v8  ;;  %v3843_v8 = vld [vmem:[#allocation8 + $0x268] ss:$16 sps:$4 sm:$0xff]  }
  0xf0   :  { %2530 = vmatprep.subr.bf16.mxu0 %v3797_v9 }
  0xf3   :  { %2531 = vmatpush1.bf16.msra.mxu0 %v3795_v10  ;;  %v3848_v10 = vld [vmem:[#allocation8 + $0x284] ss:$16 sps:$4 sm:$0xff]  }
  0xf4   :  { %2532 = vmatprep.subr.bf16.mxu0 %v3803_v11  ;;  %v3851_v11 = vld [vmem:[#allocation8 + $0x28c] ss:$16 sps:$4 sm:$0xff]  }
  0xf7   :  { %2533 = vmatpush1.bf16.msra.mxu0 %v3801_v12  ;;  %v3846_v12 = vld [vmem:[#allocation8 + $0x280] ss:$16 sps:$4 sm:$0xff]  }
  0xf8   :  { %2534 = vmatprep.subr.bf16.mxu0 %v3809_v13  ;;  %v3849_v13 = vld [vmem:[#allocation8 + $0x288] ss:$16 sps:$4 sm:$0xff]  }
  0xfb   :  { %2535 = vmatpush1.bf16.msra.mxu0 %v3807_v14  ;;  %v3854_v14 = vld [vmem:[#allocation8 + $0x2a4] ss:$16 sps:$4 sm:$0xff]  }
  0xfc   :  { %2536 = vmatprep.subr.bf16.mxu0 %v3815_v16 }
  0xff   :  { %2537 = vmatpush1.bf16.msra.mxu0 %v3813_v18  ;;  %v3855_v18 = vld [vmem:[#allocation8 + $0x2a8] ss:$16 sps:$4 sm:$0xff]  }
 0x100   :  { %2538 = vmatprep.subr.bf16.mxu0 %v3821_v20 }
 0x103   :  { %2539 = vmatpush1.bf16.msra.mxu0 %v3819_v22  ;;  %v3863_v22 = vld [vmem:[#allocation8 + $0x2cc] ss:$16 sps:$4 sm:$0xff]  }
 0x104   :  { %2549 = vmatprep.subr.bf16.mxu0 %v3827_v24 }
 0x181   :  { %v347_v33 = vpop.f32.mrb[0].mxu0 }
 0x182   :  { %v348_v34 = vadd.f32 %v347_v33, %v175_v31  ;;  %v349_v35 = vpop.f32.mrb[1].mxu0  ;;  %v3861_v33 = vld [vmem:[#allocation8 + $0x2c8] ss:$16 sps:$4 sm:$0xff]  }
 0x183   :  { %v350_v36 = vadd.f32 %v349_v35, %v179_v32  ;;  %v351_v37 = vpop.f32.mrb[2].mxu0  ;;  %v4649_v16 = vpop.f32.mrb[0].mxu1  ;;  %v3858_v32 = vld [vmem:[#allocation8 + $0x2c0] ss:$16 sps:$4 sm:$0xff]   ;;  %v3866_v35 = vld [vmem:[#allocation8 + $0x2e4] ss:$16 sps:$4 sm:$0xff]  }
 0x184   :  { %vm517_vm2 = vcmp.ge.f32.partialorder %v348_v34, 0.0  ;;  %v526_v39 = vmul.f32 0.1, %v348_v34  ;;  %v352_v40 = vpop.f32.mrb[3].mxu0  ;;  %v4651_v19 = vpop.f32.mrb[1].mxu1 }
 0x185   :  { %vm518_vm3 = vcmp.ge.f32.partialorder %v350_v36, 0.0  ;;  %v527_v41 = vmul.f32 0.1, %v350_v36  ;;  %v474_v23 = vpop.f32.mrb[2].mxu1  ;;  %v3864_v37 = vld [vmem:[#allocation8 + $0x2e0] ss:$16 sps:$4 sm:$0xff]  }
 0x186   :  { %v535_v42 = vsel %vm517_vm2, %v348_v34, %v526_v39  ;;  %v475_v26 = vpop.f32.mrb[3].mxu1  ;;  %v3867_v39 = vld [vmem:[#allocation8 + $0x2e8] ss:$16 sps:$4 sm:$0xff]   ;;  %v3872_v40 = vld [vmem:[#allocation8 + $0x304] ss:$16 sps:$4 sm:$0xff]  }
 0x187   :  { %v536_v43 = vsel %vm518_vm3, %v350_v36, %v527_v41  ;;  %v544_v48 = vpack.c.bf16 %v535_v42, %v535_v42  ;;  %v3869_v36 = vld [vmem:[#allocation8 + $0x2ec] ss:$16 sps:$4 sm:$0xff]   ;;  %v3870_v42 = vld [vmem:[#allocation8 + $0x300] ss:$16 sps:$4 sm:$0xff]  }
 0x188   :  { %v545_v45 = vpack.c.bf16 %v536_v43, %v536_v43  ;;  %v3875_v41 = vld [vmem:[#allocation8 + $0x30c] ss:$16 sps:$4 sm:$0xff]   ;;  %v3873_v43 = vld [vmem:[#allocation8 + $0x308] ss:$16 sps:$4 sm:$0xff]   ;;  %v3918_v26 = vld [vmem:[#allocation8 + $0x400] ss:$16 sps:$4 sm:$0xff]  }
 0x189   :  { %v4643_v51 = vpop.f32.mrb[4].mxu0 }
 0x18a   :  { %2335 = vmatprep.mubr.bf16.mxu1 %v545_v45  ;;  %2540 = vmatprep.mubr.bf16.mxu0 %v545_v45  ;;  %v390_v52 = vpop.f32.mrb[5].mxu0  ;;  %v3881_v45 = vld [vmem:[#allocation8 + $0x32c] ss:$16 sps:$4 sm:$0xff]  }
 0x18b   :  { %2336 = vmatmul.mubr.bf16.vlgmr.msra.gmra.mrb[4].mxu1 %v544_v48  ;;  %2541 = vmatmul.mubr.bf16.vlgmr.msra.gmra.mrb[16].mxu0 %v544_v48  ;;  %v391_v54 = vadd.f32 %v390_v52, %v187_v44  ;;  %v392_v55 = vpop.f32.mrb[6].mxu0  ;;  %v3878_v44 = vld [vmem:[#allocation8 + $0x324] ss:$16 sps:$4 sm:$0xff]   ;;  %v3885_v52 = vld [vmem:[#allocation8 + $0x348] ss:$16 sps:$4 sm:$0xff]  }
 0x18c   :  { %2345 = vmatpush1.bf16.msra.mxu1 %v3822_v46  ;;  %2550 = vmatpush1.bf16.msra.mxu0 %v3825_v47  ;;  %v393_v58 = vpop.f32.mrb[7].mxu0  ;;  %v3876_v46 = vld [vmem:[#allocation8 + $0x320] ss:$16 sps:$4 sm:$0xff]   ;;  %v3879_v47 = vld [vmem:[#allocation8 + $0x328] ss:$16 sps:$4 sm:$0xff]  }
 0x18d   :  { %2346 = vmatprep.subr.bf16.mxu1 %v3830_v49  ;;  %2551 = vmatprep.subr.bf16.mxu0 %v3833_v50  ;;  %vm520_vm4 = vcmp.ge.f32.partialorder %v391_v54, 0.0  ;;  %v529_v60 = vmul.f32 0.1, %v391_v54  ;;  %v3884_v48 = vld [vmem:[#allocation8 + $0x344] ss:$16 sps:$4 sm:$0xff]  }
 0x18e   :  { %v3887_v49 = vld [vmem:[#allocation8 + $0x34c] ss:$16 sps:$4 sm:$0xff]   ;;  %v3882_v50 = vld [vmem:[#allocation8 + $0x340] ss:$16 sps:$4 sm:$0xff]  }
 0x18f   :  { %v538_v61 = vsel %vm520_vm4, %v391_v54, %v529_v60  ;;  %v3893_v54 = vld [vmem:[#allocation8 + $0x36c] ss:$16 sps:$4 sm:$0xff]   ;;  %v3888_v55 = vld [vmem:[#allocation8 + $0x360] ss:$16 sps:$4 sm:$0xff]   ;;  %v194_v60 = vsub.s32 5, %v4627_v27 }
 0x190   :  { %2347 = vmatpush1.bf16.msra.mxu1 %v3828_v53  ;;  %2552 = vmatpush1.bf16.msra.mxu0 %v3831_v56  ;;  %v547_v1 = vpack.c.bf16 %v538_v61, %v538_v61  ;;  %v3890_v53 = vld [vmem:[#allocation8 + $0x364] ss:$16 sps:$4 sm:$0xff]   ;;  %v3891_v56 = vld [vmem:[#allocation8 + $0x368] ss:$16 sps:$4 sm:$0xff]   ;;  %v3899_v58 = vld [vmem:[#allocation8 + $0x38c] ss:$16 sps:$4 sm:$0xff]  }
 0x191   :  { %2348 = vmatprep.subr.bf16.mxu1 %v3836_v57  ;;  %2553 = vmatprep.subr.bf16.mxu0 %v3839_v59  ;;  %v4645_v4 = vpop.f32.mrb[8].mxu0  ;;  %v3896_v57 = vld [vmem:[#allocation8 + $0x384] ss:$16 sps:$4 sm:$0xff]   ;;  %v182_v59 = vsub.s32 2, %v4627_v27  ;;  %v3894_v61 = vld [vmem:[#allocation8 + $0x380] ss:$16 sps:$4 sm:$0xff]  }
 0x192   :  { %2376 = vmatprep.mubr.bf16.mxu1 %v547_v1  ;;  %2581 = vmatprep.mubr.bf16.mxu0 %v547_v1  ;;  %v4647_v5 = vpop.f32.mrb[9].mxu0  ;;  %v3905_v1 = vld [vmem:[#allocation8 + $0x3ac] ss:$16 sps:$4 sm:$0xff]  }
 0x193   :  { %v433_v6 = vpop.f32.mrb[10].mxu0 }
 0x194   :  { %2349 = vmatpush1.bf16.msra.mxu1 %v3834_v62  ;;  %2554 = vmatpush1.bf16.msra.mxu0 %v3837_v63  ;;  %v434_v9 = vpop.f32.mrb[11].mxu0  ;;  %v3897_v62 = vld [vmem:[#allocation8 + $0x388] ss:$16 sps:$4 sm:$0xff]   ;;  %v3902_v63 = vld [vmem:[#allocation8 + $0x3a4] ss:$16 sps:$4 sm:$0xff]  }
 0x195   :  { %2350 = vmatprep.subr.bf16.mxu1 %v3842_v2  ;;  %2555 = vmatprep.subr.bf16.mxu0 %v3845_v3  ;;  %v183_v2 = vrot.slane %v4630_v29, %v182_v59  ;;  %v195_v3 = vrot.slane %v4630_v29, %v194_v60  ;;  %v3900_v6 = vld [vmem:[#allocation8 + $0x3a0] ss:$16 sps:$4 sm:$0xff]   ;;  %v3911_v9 = vld [vmem:[#allocation8 + $0x3cc] ss:$16 sps:$4 sm:$0xff]   ;;  %v3957_v60 = vld [vmem:[#allocation8 + $0x4c8] ss:$16 sps:$4 sm:$0xff]  }
 0x198   :  { %2351 = vmatpush1.bf16.msra.mxu1 %v3840_v7  ;;  %2556 = vmatpush1.bf16.msra.mxu0 %v3843_v8  ;;  %v3903_v7 = vld [vmem:[#allocation8 + $0x3a8] ss:$16 sps:$4 sm:$0xff]   ;;  %v3908_v8 = vld [vmem:[#allocation8 + $0x3c4] ss:$16 sps:$4 sm:$0xff]  }
 0x199   :  { %2352 = vmatprep.subr.bf16.mxu1 %v3848_v10  ;;  %2557 = vmatprep.subr.bf16.mxu0 %v3851_v11  ;;  %v4653_v20 = vpop.f32.mrb[12].mxu0  ;;  %v389_v10 = vadd.f32 %v4643_v51, %v183_v2  ;;  %v432_v11 = vadd.f32 %v4647_v5, %v195_v3  ;;  %v3920_v51 = vld [vmem:[#allocation8 + $0x404] ss:$16 sps:$4 sm:$0xff]   ;;  %v3923_v5 = vld [vmem:[#allocation8 + $0x40c] ss:$16 sps:$4 sm:$0xff]  }
 0x19a   :  { %v3623_v24 = vpop.f32.mrb[13].mxu0  ;;  %v3968_v2 = vld [vmem:[#allocation8 + $0x504] ss:$16 sps:$4 sm:$0xff]   ;;  %v3971_v3 = vld [vmem:[#allocation8 + $0x50c] ss:$16 sps:$4 sm:$0xff]  }
 0x19b   :  { %v514_v31 = vpop.f32.mrb[14].mxu0  ;;  %vm519_vm5 = vcmp.ge.f32.partialorder %v389_v10, 0.0  ;;  %vm522_vm6 = vcmp.ge.f32.partialorder %v432_v11, 0.0 }
 0x19c   :  { %2353 = vmatpush1.bf16.msra.mxu1 %v3846_v12  ;;  %2558 = vmatpush1.bf16.msra.mxu0 %v3849_v13  ;;  %v3624_v34 = vpop.f32.mrb[15].mxu0  ;;  %v3906_v12 = vld [vmem:[#allocation8 + $0x3c0] ss:$16 sps:$4 sm:$0xff]   ;;  %v3909_v13 = vld [vmem:[#allocation8 + $0x3c8] ss:$16 sps:$4 sm:$0xff]  }
 0x19d   :  { %2354 = vmatprep.subr.bf16.mxu1 %v3854_v14  ;;  %2559 = vmatprep.subr.bf16.mxu0 %v3857_v15  ;;  %v3914_v14 = vld [vmem:[#allocation8 + $0x3e4] ss:$16 sps:$4 sm:$0xff]   ;;  %v3917_v15 = vld [vmem:[#allocation8 + $0x3ec] ss:$16 sps:$4 sm:$0xff]   ;;  %v3921_v31 = vld [vmem:[#allocation8 + $0x408] ss:$16 sps:$4 sm:$0xff]  }
 0x19e   :  { %v3929_v34 = vld [vmem:[#allocation8 + $0x42c] ss:$16 sps:$4 sm:$0xff]  }
 0x1a0   :  { %2355 = vmatpush1.bf16.msra.mxu1 %v3852_v17  ;;  %2560 = vmatpush1.bf16.msra.mxu0 %v3855_v18  ;;  %v528_v17 = vmul.f32 0.1, %v389_v10  ;;  %v531_v18 = vmul.f32 0.1, %v432_v11 }
 0x1a1   :  { %2356 = vmatprep.subr.bf16.mxu1 %v3860_v21  ;;  %2561 = vmatprep.subr.bf16.mxu0 %v3863_v22  ;;  %v3912_v21 = vld [vmem:[#allocation8 + $0x3e0] ss:$16 sps:$4 sm:$0xff]   ;;  %v3915_v22 = vld [vmem:[#allocation8 + $0x3e8] ss:$16 sps:$4 sm:$0xff]  }
 0x1a2   :  { %v537_v23 = vsel %vm519_vm5, %v389_v10, %v528_v17  ;;  %v540_v24 = vsel %vm522_vm6, %v432_v11, %v531_v18  ;;  %v3972_v10 = vld [vmem:[#allocation8 + $0x520] ss:$16 sps:$4 sm:$0xff]   ;;  %v3975_v11 = vld [vmem:[#allocation8 + $0x528] ss:$16 sps:$4 sm:$0xff]   ;;  %v3986_v17 = vld [vmem:[#allocation8 + $0x564] ss:$16 sps:$4 sm:$0xff]  }
 0x1a3   :  { %v3989_v18 = vld [vmem:[#allocation8 + $0x56c] ss:$16 sps:$4 sm:$0xff]  }
 0x1a4   :  { %2357 = vmatpush1.bf16.msra.mxu1 %v3858_v32  ;;  %2562 = vmatpush1.bf16.msra.mxu0 %v3861_v33  ;;  %v546_v32 = vpack.c.bf16 %v537_v23, %v537_v23  ;;  %v3926_v33 = vld [vmem:[#allocation8 + $0x424] ss:$16 sps:$4 sm:$0xff]   ;;  %v190_v23 = vsub.s32 4, %v4627_v27 }
 0x1a5   :  { %2358 = vmatprep.subr.bf16.mxu1 %v3866_v35  ;;  %2563 = vmatprep.subr.bf16.mxu0 %v3869_v36  ;;  %v549_v35 = vpack.c.bf16 %v540_v24, %v540_v24  ;;  %v3924_v36 = vld [vmem:[#allocation8 + $0x420] ss:$16 sps:$4 sm:$0xff]   ;;  %v202_v24 = vsub.s32 7, %v4627_v27 }
 0x1a8   :  { %2359 = vmatpush1.bf16.msra.mxu1 %v3864_v37  ;;  %2564 = vmatpush1.bf16.msra.mxu0 %v3867_v39  ;;  %v3927_v37 = vld [vmem:[#allocation8 + $0x428] ss:$16 sps:$4 sm:$0xff]   ;;  %v3932_v39 = vld [vmem:[#allocation8 + $0x444] ss:$16 sps:$4 sm:$0xff]  }
 0x1a9   :  { %2360 = vmatprep.subr.bf16.mxu1 %v3872_v40  ;;  %2565 = vmatprep.subr.bf16.mxu0 %v3875_v41  ;;  %v3935_v40 = vld [vmem:[#allocation8 + $0x44c] ss:$16 sps:$4 sm:$0xff]   ;;  %v3930_v41 = vld [vmem:[#allocation8 + $0x440] ss:$16 sps:$4 sm:$0xff]  }
 0x1ac   :  { %2361 = vmatpush1.bf16.msra.mxu1 %v3870_v42  ;;  %2566 = vmatpush1.bf16.msra.mxu0 %v3873_v43  ;;  %v3933_v42 = vld [vmem:[#allocation8 + $0x448] ss:$16 sps:$4 sm:$0xff]   ;;  %v3938_v43 = vld [vmem:[#allocation8 + $0x464] ss:$16 sps:$4 sm:$0xff]  }
 0x1ad   :  { %2362 = vmatprep.subr.bf16.mxu1 %v3878_v44  ;;  %2567 = vmatprep.subr.bf16.mxu0 %v3881_v45  ;;  %v3941_v44 = vld [vmem:[#allocation8 + $0x46c] ss:$16 sps:$4 sm:$0xff]   ;;  %v3936_v45 = vld [vmem:[#allocation8 + $0x460] ss:$16 sps:$4 sm:$0xff]  }
 0x1b0   :  { %2363 = vmatpush1.bf16.msra.mxu1 %v3876_v46  ;;  %2568 = vmatpush1.bf16.msra.mxu0 %v3879_v47  ;;  %v3939_v46 = vld [vmem:[#allocation8 + $0x468] ss:$16 sps:$4 sm:$0xff]   ;;  %v3944_v47 = vld [vmem:[#allocation8 + $0x484] ss:$16 sps:$4 sm:$0xff]  }
 0x1b1   :  { %2364 = vmatprep.subr.bf16.mxu1 %v3884_v48  ;;  %2569 = vmatprep.subr.bf16.mxu0 %v3887_v49  ;;  %v3947_v48 = vld [vmem:[#allocation8 + $0x48c] ss:$16 sps:$4 sm:$0xff]   ;;  %v3942_v49 = vld [vmem:[#allocation8 + $0x480] ss:$16 sps:$4 sm:$0xff]  }
 0x1b4   :  { %2365 = vmatpush1.bf16.msra.mxu1 %v3882_v50  ;;  %2570 = vmatpush1.bf16.msra.mxu0 %v3885_v52  ;;  %v3945_v50 = vld [vmem:[#allocation8 + $0x488] ss:$16 sps:$4 sm:$0xff]   ;;  %v3950_v52 = vld [vmem:[#allocation8 + $0x4a4] ss:$16 sps:$4 sm:$0xff]  }
 0x1b5   :  { %2366 = vmatprep.subr.bf16.mxu1 %v3890_v53  ;;  %2571 = vmatprep.subr.bf16.mxu0 %v3893_v54  ;;  %v3953_v53 = vld [vmem:[#allocation8 + $0x4ac] ss:$16 sps:$4 sm:$0xff]   ;;  %v3948_v54 = vld [vmem:[#allocation8 + $0x4a0] ss:$16 sps:$4 sm:$0xff]  }
 0x1b8   :  { %2367 = vmatpush1.bf16.msra.mxu1 %v3888_v55  ;;  %2572 = vmatpush1.bf16.msra.mxu0 %v3891_v56  ;;  %v3951_v55 = vld [vmem:[#allocation8 + $0x4a8] ss:$16 sps:$4 sm:$0xff]   ;;  %v3956_v56 = vld [vmem:[#allocation8 + $0x4c4] ss:$16 sps:$4 sm:$0xff]  }
 0x1b9   :  { %2368 = vmatprep.subr.bf16.mxu1 %v3896_v57  ;;  %2573 = vmatprep.subr.bf16.mxu0 %v3899_v58  ;;  %v3959_v57 = vld [vmem:[#allocation8 + $0x4cc] ss:$16 sps:$4 sm:$0xff]   ;;  %v3954_v58 = vld [vmem:[#allocation8 + $0x4c0] ss:$16 sps:$4 sm:$0xff]  }
 0x1bc   :  { %2369 = vmatpush1.bf16.msra.mxu1 %v3894_v61  ;;  %2574 = vmatpush1.bf16.msra.mxu0 %v3897_v62  ;;  %v3962_v61 = vld [vmem:[#allocation8 + $0x4e4] ss:$16 sps:$4 sm:$0xff]   ;;  %v3965_v62 = vld [vmem:[#allocation8 + $0x4ec] ss:$16 sps:$4 sm:$0xff]  }
 0x1bd   :  { %2370 = vmatprep.subr.bf16.mxu1 %v3902_v63  ;;  %2575 = vmatprep.subr.bf16.mxu0 %v3905_v1  ;;  %v3960_v63 = vld [vmem:[#allocation8 + $0x4e0] ss:$16 sps:$4 sm:$0xff]   ;;  %v3963_v1 = vld [vmem:[#allocation8 + $0x4e8] ss:$16 sps:$4 sm:$0xff]  }
 0x1c0   :  { %2371 = vmatpush1.bf16.msra.mxu1 %v3900_v6  ;;  %2576 = vmatpush1.bf16.msra.mxu0 %v3903_v7  ;;  %v3966_v6 = vld [vmem:[#allocation8 + $0x500] ss:$16 sps:$4 sm:$0xff]   ;;  %v3969_v7 = vld [vmem:[#allocation8 + $0x508] ss:$16 sps:$4 sm:$0xff]  }
 0x1c1   :  { %2372 = vmatprep.subr.bf16.mxu1 %v3908_v8  ;;  %2577 = vmatprep.subr.bf16.mxu0 %v3911_v9  ;;  %v3974_v8 = vld [vmem:[#allocation8 + $0x524] ss:$16 sps:$4 sm:$0xff]   ;;  %v3977_v9 = vld [vmem:[#allocation8 + $0x52c] ss:$16 sps:$4 sm:$0xff]  }
 0x1c4   :  { %2373 = vmatpush1.bf16.msra.mxu1 %v3906_v12  ;;  %2578 = vmatpush1.bf16.msra.mxu0 %v3909_v13  ;;  %v3980_v12 = vld [vmem:[#allocation8 + $0x544] ss:$16 sps:$4 sm:$0xff]   ;;  %v3983_v13 = vld [vmem:[#allocation8 + $0x54c] ss:$16 sps:$4 sm:$0xff]  }
 0x1c5   :  { %2374 = vmatprep.subr.bf16.mxu1 %v3914_v14  ;;  %2579 = vmatprep.subr.bf16.mxu0 %v3917_v15  ;;  %v3978_v14 = vld [vmem:[#allocation8 + $0x540] ss:$16 sps:$4 sm:$0xff]   ;;  %v3981_v15 = vld [vmem:[#allocation8 + $0x548] ss:$16 sps:$4 sm:$0xff]  }
 0x1c8   :  { %2375 = vmatpush1.bf16.msra.mxu1 %v3912_v21  ;;  %2580 = vmatpush1.bf16.msra.mxu0 %v3915_v22  ;;  %v3984_v21 = vld [vmem:[#allocation8 + $0x560] ss:$16 sps:$4 sm:$0xff]   ;;  %v3987_v22 = vld [vmem:[#allocation8 + $0x568] ss:$16 sps:$4 sm:$0xff]  }
 0x1c9   :  { %2385 = vmatprep.subr.bf16.mxu1 %v3920_v51  ;;  %2590 = vmatprep.subr.bf16.mxu0 %v3923_v5  ;;  %v3992_v51 = vld [vmem:[#allocation8 + $0x584] ss:$16 sps:$4 sm:$0xff]   ;;  %v3995_v5 = vld [vmem:[#allocation8 + $0x58c] ss:$16 sps:$4 sm:$0xff]  }
 0x1cb   :  { %2377 = vmatmul.mubr.bf16.vlgmr.msra.gmra.mrb[4].mxu1 %v546_v32  ;;  %2582 = vmatmul.mubr.bf16.vlgmr.msra.gmra.mrb[16].mxu0 %v546_v32  ;;  %v3998_v32 = vld [vmem:[#allocation8 + $0x5a4] ss:$16 sps:$4 sm:$0xff]  }
 0x1cc   :  { %2386 = vmatpush1.bf16.msra.mxu1 %v3918_v26  ;;  %2591 = vmatpush1.bf16.msra.mxu0 %v3921_v31  ;;  %v3990_v26 = vld [vmem:[#allocation8 + $0x580] ss:$16 sps:$4 sm:$0xff]   ;;  %v3993_v31 = vld [vmem:[#allocation8 + $0x588] ss:$16 sps:$4 sm:$0xff]  }
 0x1cd   :  { %2387 = vmatprep.subr.bf16.mxu1 %v3926_v33  ;;  %2592 = vmatprep.subr.bf16.mxu0 %v3929_v34  ;;  %v4001_v33 = vld [vmem:[#allocation8 + $0x5ac] ss:$16 sps:$4 sm:$0xff]   ;;  %v191_v34 = vrot.slane %v4630_v29, %v190_v23  ;;  %v4058_v23 = vld [vmem:[#allocation8 + $0x6e4] ss:$16 sps:$4 sm:$0xff]  }
 0x1ce   :  { %2417 = vmatprep.mubr.bf16.mxu1 %v549_v35  ;;  %2622 = vmatprep.mubr.bf16.mxu0 %v549_v35  ;;  %v203_v35 = vrot.slane %v4630_v29, %v202_v24  ;;  %v4061_v24 = vld [vmem:[#allocation8 + $0x6ec] ss:$16 sps:$4 sm:$0xff]  }
 0x1d0   :  { %2388 = vmatpush1.bf16.msra.mxu1 %v3924_v36  ;;  %2593 = vmatpush1.bf16.msra.mxu0 %v3927_v37  ;;  %v3996_v36 = vld [vmem:[#allocation8 + $0x5a0] ss:$16 sps:$4 sm:$0xff]   ;;  %v3999_v37 = vld [vmem:[#allocation8 + $0x5a8] ss:$16 sps:$4 sm:$0xff]  }
 0x1d1   :  { %2389 = vmatprep.subr.bf16.mxu1 %v3932_v39  ;;  %2594 = vmatprep.subr.bf16.mxu0 %v3935_v40  ;;  %v4004_v39 = vld [vmem:[#allocation8 + $0x5c4] ss:$16 sps:$4 sm:$0xff]   ;;  %v4007_v40 = vld [vmem:[#allocation8 + $0x5cc] ss:$16 sps:$4 sm:$0xff]  }
 0x1d4   :  { %2390 = vmatpush1.bf16.msra.mxu1 %v3930_v41  ;;  %2595 = vmatpush1.bf16.msra.mxu0 %v3933_v42  ;;  %v430_v41 = vadd.f32 %v4645_v4, %v191_v34  ;;  %v473_v42 = vadd.f32 %v4651_v19, %v203_v35  ;;  %v4016_v4 = vld [vmem:[#allocation8 + $0x604] ss:$16 sps:$4 sm:$0xff]   ;;  %v4019_v19 = vld [vmem:[#allocation8 + $0x60c] ss:$16 sps:$4 sm:$0xff]   ;;  %v4062_v34 = vld [vmem:[#allocation8 + $0x700] ss:$16 sps:$4 sm:$0xff]  }
 0x1d5   :  { %2391 = vmatprep.subr.bf16.mxu1 %v3938_v43  ;;  %2596 = vmatprep.subr.bf16.mxu0 %v3941_v44  ;;  %v4002_v43 = vld [vmem:[#allocation8 + $0x5c0] ss:$16 sps:$4 sm:$0xff]   ;;  %v4005_v44 = vld [vmem:[#allocation8 + $0x5c8] ss:$16 sps:$4 sm:$0xff]  }
 0x1d6   :  { %vm521_vm7 = vcmp.ge.f32.partialorder %v430_v41, 0.0  ;;  %vm524_vm8 = vcmp.ge.f32.partialorder %v473_v42, 0.0  ;;  %v4065_v35 = vld [vmem:[#allocation8 + $0x708] ss:$16 sps:$4 sm:$0xff]  }
 0x1d8   :  { %2392 = vmatpush1.bf16.msra.mxu1 %v3936_v45  ;;  %2597 = vmatpush1.bf16.msra.mxu0 %v3939_v46  ;;  %v4010_v45 = vld [vmem:[#allocation8 + $0x5e4] ss:$16 sps:$4 sm:$0xff]   ;;  %v4013_v46 = vld [vmem:[#allocation8 + $0x5ec] ss:$16 sps:$4 sm:$0xff]  }
 0x1d9   :  { %2393 = vmatprep.subr.bf16.mxu1 %v3944_v47  ;;  %2598 = vmatprep.subr.bf16.mxu0 %v3947_v48  ;;  %v530_v47 = vmul.f32 0.1, %v430_v41  ;;  %v533_v48 = vmul.f32 0.1, %v473_v42 }
 0x1dc   :  { %2394 = vmatpush1.bf16.msra.mxu1 %v3942_v49  ;;  %2599 = vmatpush1.bf16.msra.mxu0 %v3945_v50  ;;  %v4008_v49 = vld [vmem:[#allocation8 + $0x5e0] ss:$16 sps:$4 sm:$0xff]   ;;  %v4011_v50 = vld [vmem:[#allocation8 + $0x5e8] ss:$16 sps:$4 sm:$0xff]  }
 0x1dd   :  { %2395 = vmatprep.subr.bf16.mxu1 %v3950_v52  ;;  %2600 = vmatprep.subr.bf16.mxu0 %v3953_v53  ;;  %v539_v52 = vsel %vm521_vm7, %v430_v41, %v530_v47  ;;  %v542_v53 = vsel %vm524_vm8, %v473_v42, %v533_v48  ;;  %v4076_v41 = vld [vmem:[#allocation8 + $0x744] ss:$16 sps:$4 sm:$0xff]   ;;  %v4079_v42 = vld [vmem:[#allocation8 + $0x74c] ss:$16 sps:$4 sm:$0xff]   ;;  %v4080_v47 = vld [vmem:[#allocation8 + $0x760] ss:$16 sps:$4 sm:$0xff]  }
 0x1de   :  { %v4083_v48 = vld [vmem:[#allocation8 + $0x768] ss:$16 sps:$4 sm:$0xff]  }
 0x1e0   :  { %2396 = vmatpush1.bf16.msra.mxu1 %v3948_v54  ;;  %2601 = vmatpush1.bf16.msra.mxu0 %v3951_v55  ;;  %v4014_v54 = vld [vmem:[#allocation8 + $0x600] ss:$16 sps:$4 sm:$0xff]   ;;  %v4017_v55 = vld [vmem:[#allocation8 + $0x608] ss:$16 sps:$4 sm:$0xff]  }
 0x1e1   :  { %2397 = vmatprep.subr.bf16.mxu1 %v3956_v56  ;;  %2602 = vmatprep.subr.bf16.mxu0 %v3959_v57  ;;  %v548_v56 = vpack.c.bf16 %v539_v52, %v539_v52  ;;  %v4022_v57 = vld [vmem:[#allocation8 + $0x624] ss:$16 sps:$4 sm:$0xff]   ;;  %v4089_v52 = vld [vmem:[#allocation8 + $0x788] ss:$16 sps:$4 sm:$0xff]  }
 0x1e4   :  { %2398 = vmatpush1.bf16.msra.mxu1 %v3954_v58  ;;  %2603 = vmatpush1.bf16.msra.mxu0 %v3957_v60  ;;  %v4025_v58 = vld [vmem:[#allocation8 + $0x62c] ss:$16 sps:$4 sm:$0xff]   ;;  %v551_v60 = vpack.c.bf16 %v542_v53, %v542_v53  ;;  %v4094_v53 = vld [vmem:[#allocation8 + $0x7a4] ss:$16 sps:$4 sm:$0xff]  }
 0x1e5   :  { %2399 = vmatprep.subr.bf16.mxu1 %v3962_v61  ;;  %2604 = vmatprep.subr.bf16.mxu0 %v3965_v62  ;;  %v4020_v61 = vld [vmem:[#allocation8 + $0x620] ss:$16 sps:$4 sm:$0xff]   ;;  %v4023_v62 = vld [vmem:[#allocation8 + $0x628] ss:$16 sps:$4 sm:$0xff]  }
 0x1e8   :  { %2400 = vmatpush1.bf16.msra.mxu1 %v3960_v63  ;;  %2605 = vmatpush1.bf16.msra.mxu0 %v3963_v1  ;;  %v4028_v63 = vld [vmem:[#allocation8 + $0x644] ss:$16 sps:$4 sm:$0xff]   ;;  %v4031_v1 = vld [vmem:[#allocation8 + $0x64c] ss:$16 sps:$4 sm:$0xff]  }
 0x1e9   :  { %2401 = vmatprep.subr.bf16.mxu1 %v3968_v2  ;;  %2606 = vmatprep.subr.bf16.mxu0 %v3971_v3  ;;  %v4026_v2 = vld [vmem:[#allocation8 + $0x640] ss:$16 sps:$4 sm:$0xff]   ;;  %v4029_v3 = vld [vmem:[#allocation8 + $0x648] ss:$16 sps:$4 sm:$0xff]  }
 0x1ec   :  { %2402 = vmatpush1.bf16.msra.mxu1 %v3966_v6  ;;  %2607 = vmatpush1.bf16.msra.mxu0 %v3969_v7  ;;  %v4034_v6 = vld [vmem:[#allocation8 + $0x664] ss:$16 sps:$4 sm:$0xff]   ;;  %v4037_v7 = vld [vmem:[#allocation8 + $0x66c] ss:$16 sps:$4 sm:$0xff]  }
 0x1ed   :  { %2403 = vmatprep.subr.bf16.mxu1 %v3974_v8  ;;  %2608 = vmatprep.subr.bf16.mxu0 %v3977_v9  ;;  %v4032_v8 = vld [vmem:[#allocation8 + $0x660] ss:$16 sps:$4 sm:$0xff]   ;;  %v4035_v9 = vld [vmem:[#allocation8 + $0x668] ss:$16 sps:$4 sm:$0xff]  }
 0x1f0   :  { %2404 = vmatpush1.bf16.msra.mxu1 %v3972_v10  ;;  %2609 = vmatpush1.bf16.msra.mxu0 %v3975_v11  ;;  %v4040_v10 = vld [vmem:[#allocation8 + $0x684] ss:$16 sps:$4 sm:$0xff]   ;;  %v4043_v11 = vld [vmem:[#allocation8 + $0x68c] ss:$16 sps:$4 sm:$0xff]  }
 0x1f1   :  { %2405 = vmatprep.subr.bf16.mxu1 %v3980_v12  ;;  %2610 = vmatprep.subr.bf16.mxu0 %v3983_v13  ;;  %v4038_v12 = vld [vmem:[#allocation8 + $0x680] ss:$16 sps:$4 sm:$0xff]   ;;  %v4041_v13 = vld [vmem:[#allocation8 + $0x688] ss:$16 sps:$4 sm:$0xff]  }
 0x1f4   :  { %2406 = vmatpush1.bf16.msra.mxu1 %v3978_v14  ;;  %2611 = vmatpush1.bf16.msra.mxu0 %v3981_v15  ;;  %v4046_v14 = vld [vmem:[#allocation8 + $0x6a4] ss:$16 sps:$4 sm:$0xff]   ;;  %v4049_v15 = vld [vmem:[#allocation8 + $0x6ac] ss:$16 sps:$4 sm:$0xff]  }
 0x1f5   :  { %2407 = vmatprep.subr.bf16.mxu1 %v3986_v17  ;;  %2612 = vmatprep.subr.bf16.mxu0 %v3989_v18  ;;  %v4044_v17 = vld [vmem:[#allocation8 + $0x6a0] ss:$16 sps:$4 sm:$0xff]   ;;  %v4047_v18 = vld [vmem:[#allocation8 + $0x6a8] ss:$16 sps:$4 sm:$0xff]  }
 0x1f8   :  { %2408 = vmatpush1.bf16.msra.mxu1 %v3984_v21  ;;  %2613 = vmatpush1.bf16.msra.mxu0 %v3987_v22  ;;  %v4052_v21 = vld [vmem:[#allocation8 + $0x6c4] ss:$16 sps:$4 sm:$0xff]   ;;  %v4055_v22 = vld [vmem:[#allocation8 + $0x6cc] ss:$16 sps:$4 sm:$0xff]  }
 0x1f9   :  { %2409 = vmatprep.subr.bf16.mxu1 %v3992_v51  ;;  %2614 = vmatprep.subr.bf16.mxu0 %v3995_v5  ;;  %v4050_v51 = vld [vmem:[#allocation8 + $0x6c0] ss:$16 sps:$4 sm:$0xff]   ;;  %v4053_v5 = vld [vmem:[#allocation8 + $0x6c8] ss:$16 sps:$4 sm:$0xff]  }
 0x1fc   :  { %2410 = vmatpush1.bf16.msra.mxu1 %v3990_v26  ;;  %2615 = vmatpush1.bf16.msra.mxu0 %v3993_v31  ;;  %v4056_v26 = vld [vmem:[#allocation8 + $0x6e0] ss:$16 sps:$4 sm:$0xff]   ;;  %v4059_v31 = vld [vmem:[#allocation8 + $0x6e8] ss:$16 sps:$4 sm:$0xff]  }
 0x1fd   :  { %2411 = vmatprep.subr.bf16.mxu1 %v3998_v32  ;;  %2616 = vmatprep.subr.bf16.mxu0 %v4001_v33  ;;  %v4064_v32 = vld [vmem:[#allocation8 + $0x704] ss:$16 sps:$4 sm:$0xff]   ;;  %v4067_v33 = vld [vmem:[#allocation8 + $0x70c] ss:$16 sps:$4 sm:$0xff]  }
 0x200   :  { %2412 = vmatpush1.bf16.msra.mxu1 %v3996_v36  ;;  %2617 = vmatpush1.bf16.msra.mxu0 %v3999_v37  ;;  %v4070_v36 = vld [vmem:[#allocation8 + $0x724] ss:$16 sps:$4 sm:$0xff]   ;;  %v4073_v37 = vld [vmem:[#allocation8 + $0x72c] ss:$16 sps:$4 sm:$0xff]  }
 0x201   :  { %2413 = vmatprep.subr.bf16.mxu1 %v4004_v39  ;;  %2618 = vmatprep.subr.bf16.mxu0 %v4007_v40  ;;  %v4068_v39 = vld [vmem:[#allocation8 + $0x720] ss:$16 sps:$4 sm:$0xff]   ;;  %v4071_v40 = vld [vmem:[#allocation8 + $0x728] ss:$16 sps:$4 sm:$0xff]  }
 0x204   :  { %2414 = vmatpush1.bf16.msra.mxu1 %v4002_v43  ;;  %2619 = vmatpush1.bf16.msra.mxu0 %v4005_v44  ;;  %v4074_v43 = vld [vmem:[#allocation8 + $0x740] ss:$16 sps:$4 sm:$0xff]   ;;  %v4077_v44 = vld [vmem:[#allocation8 + $0x748] ss:$16 sps:$4 sm:$0xff]  }
 0x205   :  { %2415 = vmatprep.subr.bf16.mxu1 %v4010_v45  ;;  %2620 = vmatprep.subr.bf16.mxu0 %v4013_v46  ;;  %v4082_v45 = vld [vmem:[#allocation8 + $0x764] ss:$16 sps:$4 sm:$0xff]   ;;  %v4085_v46 = vld [vmem:[#allocation8 + $0x76c] ss:$16 sps:$4 sm:$0xff]  }
 0x208   :  { %2416 = vmatpush1.bf16.msra.mxu1 %v4008_v49  ;;  %2621 = vmatpush1.bf16.msra.mxu0 %v4011_v50  ;;  %v4088_v49 = vld [vmem:[#allocation8 + $0x784] ss:$16 sps:$4 sm:$0xff]   ;;  %v4091_v50 = vld [vmem:[#allocation8 + $0x78c] ss:$16 sps:$4 sm:$0xff]  }
 0x209   :  { %2426 = vmatprep.subr.bf16.mxu1 %v4016_v4  ;;  %2631 = vmatprep.subr.bf16.mxu0 %v4019_v19  ;;  %v198_v4 = vsub.s32 6, %v4627_v27  ;;  %v4086_v19 = vld [vmem:[#allocation8 + $0x780] ss:$16 sps:$4 sm:$0xff]  }
 0x20b   :  { %2418 = vmatmul.mubr.bf16.vlgmr.msra.gmra.mrb[4].mxu1 %v548_v56  ;;  %2623 = vmatmul.mubr.bf16.vlgmr.msra.gmra.mrb[16].mxu0 %v548_v56  ;;  %v4092_v56 = vld [vmem:[#allocation8 + $0x7a0] ss:$16 sps:$4 sm:$0xff]  }
 0x20c   :  { %2427 = vmatpush1.bf16.msra.mxu1 %v4014_v54  ;;  %2632 = vmatpush1.bf16.msra.mxu0 %v4017_v55  ;;  %v4097_v54 = vld [vmem:[#allocation8 + $0x7ac] ss:$16 sps:$4 sm:$0xff]   ;;  %v199_v55 = vrot.slane %v4630_v29, %v198_v4  ;;  %v4104_v29 = vld [vmem:[#allocation8 + $0x7e0] ss:$16 sps:$4 sm:$0xff]  }
 0x20d   :  { %2428 = vmatprep.subr.bf16.mxu1 %v4022_v57  ;;  %2633 = vmatprep.subr.bf16.mxu0 %v4025_v58  ;;  %v4095_v57 = vld [vmem:[#allocation8 + $0x7a8] ss:$16 sps:$4 sm:$0xff]   ;;  %v4100_v58 = vld [vmem:[#allocation8 + $0x7c4] ss:$16 sps:$4 sm:$0xff]  }
 0x20e   :  { %2458 = vmatprep.mubr.bf16.mxu1 %v551_v60  ;;  %2663 = vmatprep.mubr.bf16.mxu0 %v551_v60  ;;  %v4103_v60 = vld [vmem:[#allocation8 + $0x7cc] ss:$16 sps:$4 sm:$0xff]  }
 0x210   :  { %2429 = vmatpush1.bf16.msra.mxu1 %v4020_v61  ;;  %2634 = vmatpush1.bf16.msra.mxu0 %v4023_v62  ;;  %v471_v61 = vadd.f32 %v4649_v16, %v199_v55  ;;  %v4098_v62 = vld [vmem:[#allocation8 + $0x7c0] ss:$16 sps:$4 sm:$0xff]  }
 0x211   :  { %2430 = vmatprep.subr.bf16.mxu1 %v4028_v63  ;;  %2635 = vmatprep.subr.bf16.mxu0 %v4031_v1  ;;  %v4101_v63 = vld [vmem:[#allocation8 + $0x7c8] ss:$16 sps:$4 sm:$0xff]   ;;  %v4106_v1 = vld [vmem:[#allocation8 + $0x7e4] ss:$16 sps:$4 sm:$0xff]   ;;  %v4110_v16 = vld [vmem:[#allocation8 + $0x800] ss:$16 sps:$4 sm:$0xff]  }
 0x212   :  { %vm523_vm9 = vcmp.ge.f32.partialorder %v471_v61, 0.0  ;;  %v4164_v55 = vld [vmem:[#allocation11 + $0x8] sm:$0xff]  }
 0x214   :  { %2431 = vmatpush1.bf16.msra.mxu1 %v4026_v2  ;;  %2636 = vmatpush1.bf16.msra.mxu0 %v4029_v3  ;;  %v4109_v2 = vld [vmem:[#allocation8 + $0x7ec] ss:$16 sps:$4 sm:$0xff]   ;;  %v532_v3 = vmul.f32 0.1, %v471_v61 }
 0x215   :  { %2432 = vmatprep.subr.bf16.mxu1 %v4034_v6  ;;  %2637 = vmatprep.subr.bf16.mxu0 %v4037_v7  ;;  %v4107_v6 = vld [vmem:[#allocation8 + $0x7e8] ss:$16 sps:$4 sm:$0xff]   ;;  %v4112_v7 = vld [vmem:[#allocation8 + $0x804] ss:$16 sps:$4 sm:$0xff]  }
 0x218   :  { %2433 = vmatpush1.bf16.msra.mxu1 %v4032_v8  ;;  %2638 = vmatpush1.bf16.msra.mxu0 %v4035_v9  ;;  %v4115_v8 = vld [vmem:[#allocation8 + $0x80c] ss:$16 sps:$4 sm:$0xff]   ;;  %v541_v9 = vsel %vm523_vm9, %v471_v61, %v532_v3  ;;  %v4169_v61 = vld [vmem:[#allocation11 + $0x90] sm:$0xff]   ;;  %v4174_v3 = vld [vmem:[#allocation11 + $0x60] sm:$0xff]  }
 0x219   :  { %2434 = vmatprep.subr.bf16.mxu1 %v4040_v10  ;;  %2639 = vmatprep.subr.bf16.mxu0 %v4043_v11  ;;  %v4113_v10 = vld [vmem:[#allocation8 + $0x808] ss:$16 sps:$4 sm:$0xff]   ;;  %v550_v11 = vpack.c.bf16 %v541_v9, %v541_v9  ;;  %v4179_v9 = vld [vmem:[#allocation11 + $0xe8] sm:$0xff]  }
 0x21c   :  { %2435 = vmatpush1.bf16.msra.mxu1 %v4038_v12  ;;  %2640 = vmatpush1.bf16.msra.mxu0 %v4041_v13  ;;  %v4118_v12 = vld [vmem:[#allocation8 + $0x824] ss:$16 sps:$4 sm:$0xff]   ;;  %v4121_v13 = vld [vmem:[#allocation8 + $0x82c] ss:$16 sps:$4 sm:$0xff]  }
 0x21d   :  { %2436 = vmatprep.subr.bf16.mxu1 %v4046_v14  ;;  %2641 = vmatprep.subr.bf16.mxu0 %v4049_v15  ;;  %v4116_v14 = vld [vmem:[#allocation8 + $0x820] ss:$16 sps:$4 sm:$0xff]   ;;  %v4119_v15 = vld [vmem:[#allocation8 + $0x828] ss:$16 sps:$4 sm:$0xff]  }
 0x220   :  { %2437 = vmatpush1.bf16.msra.mxu1 %v4044_v17  ;;  %2642 = vmatpush1.bf16.msra.mxu0 %v4047_v18  ;;  %v4124_v17 = vld [vmem:[#allocation8 + $0x844] ss:$16 sps:$4 sm:$0xff]   ;;  %v4127_v18 = vld [vmem:[#allocation8 + $0x84c] ss:$16 sps:$4 sm:$0xff]  }
 0x221   :  { %2438 = vmatprep.subr.bf16.mxu1 %v4052_v21  ;;  %2643 = vmatprep.subr.bf16.mxu0 %v4055_v22  ;;  %v4122_v21 = vld [vmem:[#allocation8 + $0x840] ss:$16 sps:$4 sm:$0xff]   ;;  %v4125_v22 = vld [vmem:[#allocation8 + $0x848] ss:$16 sps:$4 sm:$0xff]  }
 0x224   :  { %2439 = vmatpush1.bf16.msra.mxu1 %v4050_v51  ;;  %2644 = vmatpush1.bf16.msra.mxu0 %v4053_v5  ;;  %v4130_v51 = vld [vmem:[#allocation8 + $0x864] ss:$16 sps:$4 sm:$0xff]   ;;  %v4133_v5 = vld [vmem:[#allocation8 + $0x86c] ss:$16 sps:$4 sm:$0xff]  }
 0x225   :  { %2440 = vmatprep.subr.bf16.mxu1 %v4058_v23  ;;  %2645 = vmatprep.subr.bf16.mxu0 %v4061_v24  ;;  %v4128_v23 = vld [vmem:[#allocation8 + $0x860] ss:$16 sps:$4 sm:$0xff]   ;;  %v4131_v24 = vld [vmem:[#allocation8 + $0x868] ss:$16 sps:$4 sm:$0xff]  }
 0x228   :  { %2441 = vmatpush1.bf16.msra.mxu1 %v4056_v26  ;;  %2646 = vmatpush1.bf16.msra.mxu0 %v4059_v31  ;;  %v4136_v26 = vld [vmem:[#allocation8 + $0x884] ss:$16 sps:$4 sm:$0xff]   ;;  %v4139_v31 = vld [vmem:[#allocation8 + $0x88c] ss:$16 sps:$4 sm:$0xff]  }
 0x229   :  { %2442 = vmatprep.subr.bf16.mxu1 %v4064_v32  ;;  %2647 = vmatprep.subr.bf16.mxu0 %v4067_v33  ;;  %v4134_v32 = vld [vmem:[#allocation8 + $0x880] ss:$16 sps:$4 sm:$0xff]   ;;  %v4142_v33 = vld [vmem:[#allocation8 + $0x8a4] ss:$16 sps:$4 sm:$0xff]  }
 0x22c   :  { %2443 = vmatpush1.bf16.msra.mxu1 %v4062_v34  ;;  %2648 = vmatpush1.bf16.msra.mxu0 %v4065_v35  ;;  %v4145_v34 = vld [vmem:[#allocation8 + $0x8ac] ss:$16 sps:$4 sm:$0xff]  }
 0x22d   :  { %2444 = vmatprep.subr.bf16.mxu1 %v4070_v36  ;;  %2649 = vmatprep.subr.bf16.mxu0 %v4073_v37  ;;  %v3207_v35 = vld [vmem:[#allocation7 + $0x8] ss:$0 sm:$0xff]  ;;  %v4140_v36 = vld [vmem:[#allocation8 + $0x8a0] ss:$16 sps:$4 sm:$0xff]   ;;  %v4143_v37 = vld [vmem:[#allocation8 + $0x8a8] ss:$16 sps:$4 sm:$0xff]  }
 0x230   :  { %2445 = vmatpush1.bf16.msra.mxu1 %v4068_v39  ;;  %2650 = vmatpush1.bf16.msra.mxu0 %v4071_v40  ;;  %v4148_v39 = vld [vmem:[#allocation8 + $0x8c4] ss:$16 sps:$4 sm:$0xff]   ;;  %v4151_v40 = vld [vmem:[#allocation8 + $0x8cc] ss:$16 sps:$4 sm:$0xff]  }
 0x231   :  { %2446 = vmatprep.subr.bf16.mxu1 %v4076_v41  ;;  %2651 = vmatprep.subr.bf16.mxu0 %v4079_v42  ;;  %v512_v41 = vadd.f32 %v3207_v35, %v4653_v20  ;;  %v4146_v42 = vld [vmem:[#allocation8 + $0x8c0] ss:$16 sps:$4 sm:$0xff]   ;;  %v4160_v20 = vld [vmem:[#allocation11] sm:$0xff]  }
 0x233   :  { %vm525_vm10 = vcmp.ge.f32.partialorder %v512_v41, 0.0 }
 0x234   :  { %2447 = vmatpush1.bf16.msra.mxu1 %v4074_v43  ;;  %2652 = vmatpush1.bf16.msra.mxu0 %v4077_v44  ;;  %v4149_v43 = vld [vmem:[#allocation8 + $0x8c8] ss:$16 sps:$4 sm:$0xff]   ;;  %v4154_v44 = vld [vmem:[#allocation8 + $0x8e4] ss:$16 sps:$4 sm:$0xff]  }
 0x235   :  { %2448 = vmatprep.subr.bf16.mxu1 %v4082_v45  ;;  %2653 = vmatprep.subr.bf16.mxu0 %v4085_v46  ;;  %v4157_v45 = vld [vmem:[#allocation8 + $0x8ec] ss:$16 sps:$4 sm:$0xff]   ;;  %v534_v46 = vmul.f32 0.1, %v512_v41 }
 0x237   :  { %v543_v4 = vsel %vm525_vm10, %v512_v41, %v534_v46 }
 0x238   :  { %2449 = vmatpush1.bf16.msra.mxu1 %v4080_v47  ;;  %2654 = vmatpush1.bf16.msra.mxu0 %v4083_v48  ;;  %v4152_v47 = vld [vmem:[#allocation8 + $0x8e0] ss:$16 sps:$4 sm:$0xff]   ;;  %v4155_v48 = vld [vmem:[#allocation8 + $0x8e8] ss:$16 sps:$4 sm:$0xff]  }
 0x239   :  { %2450 = vmatprep.subr.bf16.mxu1 %v4088_v49  ;;  %2655 = vmatprep.subr.bf16.mxu0 %v4091_v50  ;;  %v4158_v49 = vld [vmem:[#allocation11 + $0x40] sm:$0xff]  }
 0x23a   :  { %v4159_v50 = vld [vmem:[#allocation11 + $0xc0] sm:$0xff]  }
 0x23c   :  { %2451 = vmatpush1.bf16.msra.mxu1 %v4086_v19  ;;  %2656 = vmatpush1.bf16.msra.mxu0 %v4089_v52  ;;  %v4161_v19 = vld [vmem:[#allocation11 + $0x80] sm:$0xff]   ;;  %v552_v52 = vpack.c.bf16 %v543_v4, %v543_v4  ;;  %v4192_v4 = vld [vmem:[#allocation14 + $0x10] sm:$0xff]  }
 0x23d   :  { %2452 = vmatprep.subr.bf16.mxu1 %v4094_v53  ;;  %2657 = vmatprep.subr.bf16.mxu0 %v4097_v54  ;;  %v4162_v53 = vld [vmem:[#allocation11 + $0x48] sm:$0xff]  }
 0x23e   :  { %v4163_v54 = vld [vmem:[#allocation11 + $0xc8] sm:$0xff]  }
 0x240   :  { %2453 = vmatpush1.bf16.msra.mxu1 %v4092_v56  ;;  %2658 = vmatpush1.bf16.msra.mxu0 %v4095_v57  ;;  %v4165_v56 = vld [vmem:[#allocation11 + $0x88] sm:$0xff]   ;;  %v4166_v57 = vld [vmem:[#allocation11 + $0x50] sm:$0xff]  }
 0x241   :  { %2454 = vmatprep.subr.bf16.mxu1 %v4100_v58  ;;  %2659 = vmatprep.subr.bf16.mxu0 %v4103_v60  ;;  %v4167_v58 = vld [vmem:[#allocation11 + $0xd0] sm:$0xff]  }
 0x242   :  { %v4168_v60 = vld [vmem:[#allocation11 + $0x10] sm:$0xff]  }
 0x244   :  { %2455 = vmatpush1.bf16.msra.mxu1 %v4098_v62  ;;  %2660 = vmatpush1.bf16.msra.mxu0 %v4101_v63  ;;  %v4170_v62 = vld [vmem:[#allocation11 + $0x58] sm:$0xff]  }
 0x245   :  { %2456 = vmatprep.subr.bf16.mxu1 %v4106_v1  ;;  %2661 = vmatprep.subr.bf16.mxu0 %v4109_v2  ;;  %v4171_v63 = vld [vmem:[#allocation11 + $0xd8] sm:$0xff]  }
 0x246   :  { %v4172_v1 = vld [vmem:[#allocation11 + $0x18] sm:$0xff]  }
 0x247   :  { %v4173_v2 = vld [vmem:[#allocation11 + $0x98] sm:$0xff]  }
 0x248   :  { %2457 = vmatpush1.bf16.msra.mxu1 %v4104_v29  ;;  %2662 = vmatpush1.bf16.msra.mxu0 %v4107_v6  ;;  %v4175_v29 = vld [vmem:[#allocation11 + $0xe0] sm:$0xff]  }
 0x249   :  { %2467 = vmatprep.subr.bf16.mxu1 %v4112_v7  ;;  %2672 = vmatprep.subr.bf16.mxu0 %v4115_v8  ;;  %v4176_v6 = vld [vmem:[#allocation11 + $0x20] sm:$0xff]   ;;  %v4178_v8 = vld [vmem:[#allocation11 + $0x68] sm:$0xff]  }
 0x24a   :  { %v4177_v7 = vld [vmem:[#allocation11 + $0xa0] sm:$0xff]  }
 0x24b   :  { %2459 = vmatmul.mubr.bf16.vlgmr.msra.gmra.mrb[4].mxu1 %v550_v11  ;;  %2664 = vmatmul.mubr.bf16.vlgmr.msra.gmra.mrb[16].mxu0 %v550_v11  ;;  %v4182_v11 = vld [vmem:[#allocation11 + $0x70] sm:$0xff]  }
 0x24c   :  { %2468 = vmatpush1.bf16.msra.mxu1 %v4110_v16  ;;  %2673 = vmatpush1.bf16.msra.mxu0 %v4113_v10  ;;  %v4180_v16 = vld [vmem:[#allocation11 + $0x28] sm:$0xff]  }
 0x24d   :  { %2469 = vmatprep.subr.bf16.mxu1 %v4118_v12  ;;  %2674 = vmatprep.subr.bf16.mxu0 %v4121_v13  ;;  %v4181_v10 = vld [vmem:[#allocation11 + $0xa8] sm:$0xff]   ;;  %v4183_v12 = vld [vmem:[#allocation11 + $0xf0] sm:$0xff]  }
 0x24e   :  { %2499 = vmatprep.mubr.bf16.mxu1 %v4445_v0  ;;  %2704 = vmatprep.mubr.bf16.mxu0 %v4445_v0  ;;  %v4137_v0 = vld [vmem:[#allocation8 + $0x888] ss:$16 sps:$4 sm:$0xff]  }
 0x24f   :  { %v4184_v13 = vld [vmem:[#allocation11 + $0x30] sm:$0xff]  }
 0x250   :  { %2470 = vmatpush1.bf16.msra.mxu1 %v4116_v14  ;;  %2675 = vmatpush1.bf16.msra.mxu0 %v4119_v15  ;;  %v4185_v14 = vld [vmem:[#allocation11 + $0xb0] sm:$0xff]   ;;  %v4186_v15 = vld [vmem:[#allocation11 + $0x78] sm:$0xff]  }
 0x251   :  { %2471 = vmatprep.subr.bf16.mxu1 %v4124_v17  ;;  %2676 = vmatprep.subr.bf16.mxu0 %v4127_v18  ;;  %v4187_v17 = vld [vmem:[#allocation11 + $0xf8] sm:$0xff]  }
 0x252   :  { %v4188_v18 = vld [vmem:[#allocation11 + $0x38] sm:$0xff]  }
 0x254   :  { %2472 = vmatpush1.bf16.msra.mxu1 %v4122_v21  ;;  %2677 = vmatpush1.bf16.msra.mxu0 %v4125_v22  ;;  %v4189_v21 = vld [vmem:[#allocation11 + $0xb8] sm:$0xff]  }
 0x255   :  { %2473 = vmatprep.subr.bf16.mxu1 %v4130_v51  ;;  %2678 = vmatprep.subr.bf16.mxu0 %v4133_v5  ;;  %v841_v22 = vld [vmem:[#allocation10] sm:$0xf] }
 0x256   :  { %v846_v51 = vrot.slane %v841_v22, %v174_v28  ;;  %v854_v5 = vrot.slane %v841_v22, %v182_v59 }
 0x258   :  { %2474 = vmatpush1.bf16.msra.mxu1 %v4128_v23  ;;  %2679 = vmatpush1.bf16.msra.mxu0 %v4131_v24  ;;  %v850_v23 = vrot.slane %v841_v22, %v178_v30  ;;  %v858_v24 = vrot.slane %v841_v22, %v186_v38 }
 0x259   :  { %2475 = vmatprep.subr.bf16.mxu1 %v4136_v26  ;;  %2680 = vmatprep.subr.bf16.mxu0 %v4139_v31 }
 0x25c   :  { %2476 = vmatpush1.bf16.msra.mxu1 %v4134_v32  ;;  %2681 = vmatpush1.bf16.msra.mxu0 %v4137_v0 }
 0x25d   :  { %2477 = vmatprep.subr.bf16.mxu1 %v4142_v33  ;;  %2682 = vmatprep.subr.bf16.mxu0 %v4145_v34 }
 0x260   :  { %2478 = vmatpush1.bf16.msra.mxu1 %v4140_v36  ;;  %2683 = vmatpush1.bf16.msra.mxu0 %v4143_v37 }
 0x261   :  { %2479 = vmatprep.subr.bf16.mxu1 %v4148_v39  ;;  %2684 = vmatprep.subr.bf16.mxu0 %v4151_v40 }
 0x264   :  { %2480 = vmatpush1.bf16.msra.mxu1 %v4146_v42  ;;  %2685 = vmatpush1.bf16.msra.mxu0 %v4149_v43 }
 0x265   :  { %2481 = vmatprep.subr.bf16.mxu1 %v4154_v44  ;;  %2686 = vmatprep.subr.bf16.mxu0 %v4157_v45 }
 0x268   :  { %2482 = vmatpush1.bf16.msra.mxu1 %v4152_v47  ;;  %2687 = vmatpush1.bf16.msra.mxu0 %v4155_v48  ;;  %v4190_v47 = vld [vmem:[#allocation14] sm:$0xff]  }
 0x269   :  { %3564 = vmatprep.subr.bf16.mxu1 %v4158_v49  ;;  %3586 = vmatprep.subr.bf16.mxu0 %v4159_v50  ;;  %v4191_v50 = vld [vmem:[#allocation14 + $0x8] sm:$0xff]  }
 0x26b   :  { %2500 = vmatmul.mubr.bf16.vlgmr.msra.gmra.mrb[4].mxu1 %v552_v52  ;;  %2705 = vmatmul.mubr.bf16.vlgmr.msra.gmra.mrb[16].mxu0 %v552_v52  ;;  %v4195_v52 = vld [vmem:[#allocation14 + $0x28] sm:$0xff]  }
 0x26c   :  { %3565 = vmatpush3.bf16.msra.mxu1 %v4160_v20  ;;  %3587 = vmatpush3.bf16.msra.mxu0 %v4161_v19  ;;  %v4193_v20 = vld [vmem:[#allocation14 + $0x18] sm:$0xff]   ;;  %v4194_v19 = vld [vmem:[#allocation14 + $0x20] sm:$0xff]  }
 0x26d   :  { %3566 = vmatprep.subr.bf16.mxu1 %v4162_v53  ;;  %3588 = vmatprep.subr.bf16.mxu0 %v4163_v54  ;;  %v4196_v53 = vld [vmem:[#allocation14 + $0x30] sm:$0xff]   ;;  %v4197_v54 = vld [vmem:[#allocation14 + $0x38] sm:$0xff]  }
 0x270   :  { %3567 = vmatpush3.bf16.msra.mxu1 %v4164_v55  ;;  %3589 = vmatpush3.bf16.msra.mxu0 %v4165_v56 }
 0x271   :  { %3568 = vmatprep.subr.bf16.mxu1 %v4166_v57  ;;  %3590 = vmatprep.subr.bf16.mxu0 %v4167_v58  ;;  %v3519_v57 = vld [vmem:[#allocation13] ss:$0 sm:$0xff] }
 0x274   :  { %3569 = vmatpush3.bf16.msra.mxu1 %v4168_v60  ;;  %3591 = vmatpush3.bf16.msra.mxu0 %v4169_v61 }
 0x275   :  { %3570 = vmatprep.subr.bf16.mxu1 %v4170_v62  ;;  %3592 = vmatprep.subr.bf16.mxu0 %v4171_v63 }
 0x278   :  { %3571 = vmatpush3.bf16.msra.mxu1 %v4172_v1  ;;  %3593 = vmatpush3.bf16.msra.mxu0 %v4173_v2 }
 0x279   :  { %3572 = vmatprep.subr.bf16.mxu1 %v4174_v3  ;;  %3594 = vmatprep.subr.bf16.mxu0 %v4175_v29 }
 0x27c   :  { %3573 = vmatpush3.bf16.msra.mxu1 %v4176_v6  ;;  %3595 = vmatpush3.bf16.msra.mxu0 %v4177_v7 }
 0x27d   :  { %3574 = vmatprep.subr.bf16.mxu1 %v4178_v8  ;;  %3596 = vmatprep.subr.bf16.mxu0 %v4179_v9 }
 0x280   :  { %3575 = vmatpush3.bf16.msra.mxu1 %v4180_v16  ;;  %3597 = vmatpush3.bf16.msra.mxu0 %v4181_v10 }
 0x281   :  { %3576 = vmatprep.subr.bf16.mxu1 %v4182_v11  ;;  %3598 = vmatprep.subr.bf16.mxu0 %v4183_v12 }
 0x284   :  { %3577 = vmatpush3.bf16.msra.mxu1 %v4184_v13  ;;  %3599 = vmatpush3.bf16.msra.mxu0 %v4185_v14 }
 0x285   :  { %3578 = vmatprep.subr.bf16.mxu1 %v4186_v15  ;;  %3600 = vmatprep.subr.bf16.mxu0 %v4187_v17 }
 0x288   :  { %3579 = vmatpush3.bf16.msra.mxu1 %v4188_v18  ;;  %3601 = vmatpush3.bf16.msra.mxu0 %v4189_v21 }
 0x289   :  { %3625 = vmatprep.subr.bf16.mxu1 %v4446_v25 }
 0x33e   :  { %v2501_v26 = vpop.f32.mrb[4].mxu1  ;;  %v2706_v31 = vpop.f32.mrb[16].mxu0 }
 0x33f   :  { %v3645_v32 = vadd.f32 %v2501_v26, %v846_v51  ;;  %v3647_v0 = vadd.f32 %v2706_v31, %v854_v5  ;;  %v2503_v33 = vpop.f32.mrb[5].mxu1  ;;  %v2708_v34 = vpop.f32.mrb[17].mxu0 }
 0x340   :  { %v3646_v35 = vadd.f32 %v2503_v33, %v850_v23  ;;  %v3648_v36 = vadd.f32 %v2708_v34, %v858_v24  ;;  %v2505_v37 = vpop.f32.mrb[6].mxu1  ;;  %v2710_v39 = vpop.f32.mrb[18].mxu0 }
 0x341   :  { %vm2713_vm11 = vcmp.ge.f32.partialorder %v3645_v32, 0.0  ;;  %v2717_v28 = vmul.f32 0.1, %v3645_v32  ;;  %vm2715_vm12 = vcmp.ge.f32.partialorder %v3647_v0, 0.0  ;;  %v2719_v59 = vmul.f32 0.1, %v3647_v0 }
 0x342   :  { %vm2714_vm13 = vcmp.ge.f32.partialorder %v3646_v35, 0.0  ;;  %v2718_v40 = vmul.f32 0.1, %v3646_v35  ;;  %vm2716_vm14 = vcmp.ge.f32.partialorder %v3648_v36, 0.0  ;;  %v2720_v30 = vmul.f32 0.1, %v3648_v36 }
 0x343   :  { %v2721_v27 = vsel %vm2713_vm11, %v3645_v32, %v2717_v28  ;;  %v2723_v38 = vsel %vm2715_vm12, %v3647_v0, %v2719_v59  ;;  %v2506_v41 = vpop.f32.mrb[7].mxu1  ;;  %v2711_v42 = vpop.f32.mrb[19].mxu0 }
 0x344   :  { %v2722_v43 = vsel %vm2714_vm13, %v3646_v35, %v2718_v40  ;;  %v2724_v44 = vsel %vm2716_vm14, %v3648_v36, %v2720_v30  ;;  %v2725_v48 = vpack.c.bf16 %v2721_v27, %v2721_v27  ;;  %v2727_v49 = vpack.c.bf16 %v2723_v38, %v2723_v38 }
 0x345   :  { %v2726_v45 = vpack.c.bf16 %v2722_v43, %v2722_v43  ;;  %v2728_v46 = vpack.c.bf16 %v2724_v44, %v2724_v44 }
 0x347   :  { %3024 = vmatprep.mubr.bf16.mxu1 %v2726_v45  ;;  %3064 = vmatprep.mubr.bf16.mxu0 %v2728_v46 }
 0x348   :  { %3025 = vmatmul.mubr.bf16.vlgmr.msra.gmra.mrb[8].mxu1 %v2725_v48  ;;  %3065 = vmatmul.mubr.bf16.vlgmr.msra.gmra.mrb[20].mxu0 %v2727_v49 }
 0x349   :  { %3626 = vmatpush3.bf16.msra.mxu1 %v4190_v47  ;;  %3641 = vmatprep.mubr.msk.bf16.mxu1 %vm4447_vm1, %v4446_v25 }
 0x34a   :  { %3627 = vmatprep.subr.bf16.mxu1 %v4446_v25 }
 0x34d   :  { %3628 = vmatpush3.bf16.msra.mxu1 %v4191_v50 }
 0x34e   :  { %3629 = vmatprep.subr.bf16.mxu1 %v4446_v25 }
 0x351   :  { %3630 = vmatpush3.bf16.msra.mxu1 %v4192_v4 }
 0x352   :  { %3631 = vmatprep.subr.bf16.mxu1 %v4446_v25 }
 0x355   :  { %3632 = vmatpush3.bf16.msra.mxu1 %v4193_v20 }
 0x356   :  { %3633 = vmatprep.subr.bf16.mxu1 %v4446_v25 }
 0x359   :  { %3634 = vmatpush3.bf16.msra.mxu1 %v4194_v19 }
 0x35a   :  { %3635 = vmatprep.subr.bf16.mxu1 %v4446_v25 }
 0x35d   :  { %3636 = vmatpush3.bf16.msra.mxu1 %v4195_v52 }
 0x35e   :  { %3637 = vmatprep.subr.bf16.mxu1 %v4446_v25 }
 0x361   :  { %3638 = vmatpush3.bf16.msra.mxu1 %v4196_v53 }
 0x362   :  { %3639 = vmatprep.subr.bf16.mxu1 %v4446_v25  ;;  %v3552_v25 = vld [vmem:[#allocation16] ss:$0 sm:$0xff] }
 0x365   :  { %3640 = vmatpush3.bf16.msra.mxu1 %v4197_v54 }
 0x41b   :  { %v3580_v55 = vpop.f32.mrb[8].mxu1  ;;  %v3602_v56 = vpop.f32.mrb[20].mxu0 }
 0x41c   :  { %v3581_v58 = vpop.f32.mrb[9].mxu1  ;;  %v3603_v60 = vpop.f32.mrb[21].mxu0 }
 0x41d   :  { %v3582_v61 = vadd.f32 %v3581_v58, %v3580_v55  ;;  %v3604_v62 = vadd.f32 %v3603_v60, %v3602_v56  ;;  %v3583_v63 = vpop.f32.mrb[10].mxu1  ;;  %v3605_v1 = vpop.f32.mrb[22].mxu0 }
 0x41e   :  { %v3584_v2 = vpop.f32.mrb[11].mxu1  ;;  %v3606_v3 = vpop.f32.mrb[23].mxu0 }
 0x41f   :  { %v3027_v29 = vadd.f32 %v3582_v61, %v3519_v57 }
 0x421   :  { %v3067_v6 = vadd.f32 %v3604_v62, %v3027_v29 }
 0x423   :  { %vm3072_vm15 = vcmp.ge.f32.partialorder %v3067_v6, 0.0  ;;  %v3073_v7 = vmul.f32 0.1, %v3067_v6 }
 0x425   :  { %v3074_v8 = vsel %vm3072_vm15, %v3067_v6, %v3073_v7 }
 0x426   :  { %v3075_v9 = vpack.c.bf16 %v3074_v8, %v3074_v8 }
 0x428   :  { %3642 = vmatmul.mubr.bf16.vlgmr.msra.gmra.mrb[12].mxu1 %v3075_v9 }
 0x4fb   :  { %v3181_v16 = vpop.f32.mrb[12].mxu1 }
 0x4fc   :  { %v3182_v10 = vadd.f32 %v3552_v25, %v3181_v16  ;;  %v3643_v11 = vpop.f32.mrb[13].mxu1 }
 0x4fd   :  { %v3184_v12 = vpop.f32.mrb[14].mxu1 }
 0x4fe   :  { %3187 = vst [vmem:[#allocation17] sm:$0xff] %v3182_v10  ;;  %v3644_v13 = vpop.f32.mrb[15].mxu1 }
 0x4ff   :  { %4407 = shalt.err (!%p4404_p6)
}
 0x500   :  { %s4408_s3 = scalar_lea.hbm %s4714_s9, 128 }
 0x501   :  { %p4409_p7 = scmp.ne.s32.totalorder %s4714_s9, %s4408_s3  ;;  %p4412_p8 = scmp.lt.u32.totalorder %s4408_s3, %s4714_s9 }
 0x503   :  { %p4414_p9 = pnand %p4412_p8, %p4409_p7 }
 0x505   :  { %4417 = shalt.err (!%p4414_p9)
}
 0x506   :  { %3197 = dma.vmem_to_hbm [thread:$0]  %s3195_s26, 128, %s4714_s9, [#allocation4]  }
 0x507   :  { %4428 = dma.done.wait [#allocation4], 128  }
 0x508   :  { %4429 = vsyncadd [#allocation4], 4294967168 }
 0x509   :  { %3201 = vsyncpa [#allocation3], 1 }
 0x50a   :  { %3202 = vsyncpa [#allocation6], 1 }
 0x50b   :  { %3203 = vsyncpa [#allocation9], 1 }
 0x50c   :  { %3204 = vsyncpa [#allocation12], 1 }
 0x50d   :  { %3205 = vsyncpa [#allocation15], 1 }
 0x50e   :  { %3206 = vsyncpa [#allocation4], 1 }

</bundles_post_ra>
